<compile_context>
chip_gen: v7x
topology: tpu7x:2x2x1
jax: 0.10.0
libtpu: 0.0.40
codegen_flags: <defaults>
</compile_context>

<pallas_src>
from functools import partial

import jax
import jax.numpy as jnp
from jax.experimental import pallas as pl
from jax.experimental.pallas import tpu as pltpu


# ----------------------------------------------------------------------------
# Kernel
# ----------------------------------------------------------------------------
def block_attn_kernel(x_ref,
                      ln_g_ref, ln_b_ref,
                      wq_ref, wk_ref, wv_ref,
                      wproj_ref, bproj_ref,
                      o_ref,
                      *, num_heads, matmul_dtype):
    Bt, N, C = x_ref.shape
    H = num_heads
    hd = C // H

    x = x_ref[...].astype(jnp.float32)                 # (Bt, N, C)
    x2 = x.reshape(Bt * N, C)                          # merge leading dims

    # ---- LayerNorm (f32 statistics, eps=1e-5) ----
    mu = jnp.mean(x2, axis=-1, keepdims=True)
    xc = x2 - mu
    var = jnp.mean(xc * xc, axis=-1, keepdims=True)
    h = xc * jax.lax.rsqrt(var + 1e-5) * ln_g_ref[0] + ln_b_ref[0]

    # ---- QKV projections: bf16 operands, f32 accumulation, M = Bt*N ----
    # (attention scale 1/sqrt(hd) is pre-folded into wq at prepare_params time)
    hm = h.astype(matmul_dtype)
    q = jnp.dot(hm, wq_ref[...], preferred_element_type=jnp.float32)
    k = jnp.dot(hm, wk_ref[...], preferred_element_type=jnp.float32)
    v = jnp.dot(hm, wv_ref[...], preferred_element_type=jnp.float32)

    # ---- split heads into a single merged batch dim z = h*Bt + b ----
    # Cast to bf16 BEFORE the relayout so the (m,H,hd)->(H,m,hd) move is half
    # the bytes.  Everything stays rank-3 with a single leading batch dim.
    # TODO(synk): this head split/merge is an XLU relayout (N*C elems); if the
    # MLIR shows it dominating, fold the head reduction into the proj matmul.
    def split_heads(t):
        t = t.astype(matmul_dtype).reshape(Bt * N, H, hd)
        t = jnp.transpose(t, (1, 0, 2))                # (H, Bt*N, hd)
        return t.reshape(H * Bt, N, hd)                # (H*Bt, N, hd)

    qh, kh, vh = split_heads(q), split_heads(k), split_heads(v)

    # ---- attention: one batched MXU contraction over all (head, batch) ----
    # TODO(synk): for N >= ~512 the (H*Bt, N, N) f32 logits exceed the VMEM
    # budget (esp. v7x 64 MiB) -- switch to flash-style KV tiling with online
    # softmax accumulators.  For ViT-sized N (<= ~260) this monolithic form is
    # the right choice.
    logits = jnp.einsum('zqd,zkd->zqk', qh, kh,
                        preferred_element_type=jnp.float32)       # (H*Bt, N, N)
    logits = logits - jnp.max(logits, axis=-1, keepdims=True)
    p = jnp.exp(logits)                                           # f32 exp (EUP)
    denom = jnp.sum(p, axis=-1)                                   # (H*Bt, N)

    ctx = jnp.einsum('zqk,zkd->zqd', p.astype(matmul_dtype), vh,
                     preferred_element_type=jnp.float32)          # (H*Bt, N, hd)

    # Deferred softmax normalization: one multiply per output element (N*C)
    # instead of one per attention weight (H*N*N).  Exact divide for parity
    # with the f32 reference.
    ctx = ctx * (1.0 / denom)[:, :, None]

    # ---- merge heads back: (H*Bt, N, hd) -> (Bt*N, C), bf16 through relayout
    ctx = ctx.astype(matmul_dtype).reshape(H, Bt * N, hd)
    ctx = jnp.transpose(ctx, (1, 0, 2)).reshape(Bt * N, C)

    # ---- output projection + residual (f32) ----
    out = jnp.dot(ctx, wproj_ref[...],
                  preferred_element_type=jnp.float32) + bproj_ref[0]
    o_ref[...] = (x2 + out).reshape(Bt, N, C).astype(o_ref.dtype)


# ----------------------------------------------------------------------------
# VMEM / tiling helpers
# ----------------------------------------------------------------------------
def _physical_vmem_bytes():
    try:
        return int(pltpu.get_tpu_info().vmem_capacity_bytes)
    except Exception:
        return 64 * 1024 * 1024          # conservative (v7x per-core size)


def _vmem_bytes_estimate(block_b, N, C, num_heads, matmul_dtype):
    f32 = 4
    mm = jnp.dtype(matmul_dtype).itemsize
    m = block_b * N
    io = 2 * (2 * m * C * f32)                               # x/out, double-buffered
    weights = 4 * C * C * mm + 3 * C * f32                   # single-buffered params
    act = (m * C * (f32 + mm)                                # x2/h + bf16 copy
           + 3 * m * C * (f32 + mm)                          # q,k,v + head-split copies
           + 2 * block_b * num_heads * N * N * f32           # logits + p (f32)
           + block_b * num_heads * N * N * mm                # p (bf16)
           + 2 * m * C * f32)                                # ctx + out
    return io + weights + act


def _vmem_limit_bytes(block_b, N, C, num_heads, matmul_dtype):
    phys = _physical_vmem_bytes()
    need = _vmem_bytes_estimate(block_b, N, C, num_heads, matmul_dtype)
    want = max(32 * 1024 * 1024, int(1.5 * need) + 8 * 1024 * 1024)
    return min(want, (7 * phys) // 8)     # never request the full physical VMEM


def _choose_block_b(B, N, C, num_heads, matmul_dtype):
    """Largest block_b (dividing B) s.t. block_b*N ~>= 256 and VMEM fits."""
    budget = (3 * _physical_vmem_bytes()) // 4
    bb = min(B, max(1, (256 + N - 1) // N))
    while bb > 1 and (B % bb != 0 or
                      _vmem_bytes_estimate(bb, N, C, num_heads, matmul_dtype) > budget):
        bb -= 1
    return max(bb, 1)


def _const_spec(shape):
    """Grid-invariant parameter: constant index_map (never re-DMA'd) and
    single-buffered so it does not reserve a second VMEM copy."""
    try:
        return pl.BlockSpec(shape, lambda b: (0, 0), pipeline_mode=pl.Buffered(1))
    except Exception:
        return pl.BlockSpec(shape, lambda b: (0, 0))


# ----------------------------------------------------------------------------
# Parameter prep (run ONCE at weight-load time, not per forward)
# ----------------------------------------------------------------------------
def prepare_params(params, num_heads, matmul_dtype=jnp.bfloat16):
    C = params["wproj"].shape[0]
    hd = C // num_heads
    scale = hd ** -0.5
    wqkv = params["wqkv"]                                    # (C, 3C) = [q|k|v]
    return {
        "ln1_g": params["ln1_g"].astype(jnp.float32),
        "ln1_b": params["ln1_b"].astype(jnp.float32),
        "wq": (wqkv[:, 0 * C:1 * C] * scale).astype(matmul_dtype),
        "wk": wqkv[:, 1 * C:2 * C].astype(matmul_dtype),
        "wv": wqkv[:, 2 * C:3 * C].astype(matmul_dtype),
        "wproj": params["wproj"].astype(matmul_dtype),
        "bproj": params["bproj"].astype(jnp.float32),
    }


# ----------------------------------------------------------------------------
# Forward wrapper
# ----------------------------------------------------------------------------
def block_attn_forward(x, params, num_heads, *, block_b=None,
                       matmul_dtype=jnp.bfloat16):
    B, N, C = x.shape
    assert C % num_heads == 0, "dim must be divisible by num_heads"
    if "wq" not in params:      # accept raw params, but prefer prepare_params() once
        params = prepare_params(params, num_heads, matmul_dtype)

    if block_b is None:
        block_b = _choose_block_b(B, N, C, num_heads, matmul_dtype)
    assert B % block_b == 0, "batch must be divisible by block_b"

    grid = (B // block_b,)
    x_spec = pl.BlockSpec((block_b, N, C), lambda b: (b, 0, 0))
    in_specs = [
        x_spec,
        _const_spec((1, C)), _const_spec((1, C)),            # ln1 gamma / beta
        _const_spec((C, C)), _const_spec((C, C)), _const_spec((C, C)),  # wq wk wv
        _const_spec((C, C)), _const_spec((1, C)),            # proj weight / bias
    ]

    wbytes = jnp.dtype(matmul_dtype).itemsize
    cost = pl.CostEstimate(
        flops=int(2 * B * N * C * 3 * C            # qkv
                  + 4 * B * N * N * C              # QK^T + PV
                  + 2 * B * N * C * C),            # proj
        transcendentals=int(B * num_heads * N * N),
        bytes_accessed=int(2 * B * N * C * 4       # x in + out
                           + 4 * C * C * wbytes    # wq, wk, wv, wproj
                           + 3 * C * 4),           # ln params + proj bias
    )

    return pl.pallas_call(
        partial(block_attn_kernel, num_heads=num_heads, matmul_dtype=matmul_dtype),
        out_shape=jax.ShapeDtypeStruct((B, N, C), x.dtype),
        grid=grid,
        in_specs=in_specs,
        out_specs=pl.BlockSpec((block_b, N, C), lambda b: (b, 0, 0)),
        compiler_params=pltpu.CompilerParams(
            dimension_semantics=("parallel",),     # batch blocks are independent
            vmem_limit_bytes=_vmem_limit_bytes(block_b, N, C, num_heads,
                                               matmul_dtype)),
        cost_estimate=cost,
    )(x,
      params["ln1_g"], params["ln1_b"],
      params["wq"], params["wk"], params["wv"],
      params["wproj"], params["bproj"])


# ----------------------------------------------------------------------------
# Reference (pure JAX, f32) + param init
# ----------------------------------------------------------------------------
def block_attn_reference(x, raw_params, num_heads):
    B, N, C = x.shape
    hd = C // num_heads
    mu = jnp.mean(x, -1, keepdims=True)
    var = jnp.mean((x - mu) ** 2, -1, keepdims=True)
    h = (x - mu) / jnp.sqrt(var + 1e-5) * raw_params["ln1_g"][0] + raw_params["ln1_b"][0]
    qkv = h @ raw_params["wqkv"]
    q, k, v = jnp.split(qkv, 3, axis=-1)
    q = q.reshape(B, N, num_heads, hd).transpose(0, 2, 1, 3)
    k = k.reshape(B, N, num_heads, hd).transpose(0, 2, 1, 3)
    v = v.reshape(B, N, num_heads, hd).transpose(0, 2, 1, 3)
    attn = jax.nn.softmax((q * hd ** -0.5) @ jnp.swapaxes(k, -1, -2), axis=-1)
    ctx = (attn @ v).transpose(0, 2, 1, 3).reshape(B, N, C)
    return x + (ctx @ raw_params["wproj"] + raw_params["bproj"][0])


def init_params(key, dim, dtype=jnp.float32):
    ks = jax.random.split(key, 3)
    s = 0.02
    return {
        "ln1_g": jnp.ones((1, dim), dtype),
        "ln1_b": jnp.zeros((1, dim), dtype),
        "wqkv": (s * jax.random.normal(ks[0], (dim, 3 * dim))).astype(dtype),
        "wproj": (s * jax.random.normal(ks[1], (dim, dim))).astype(dtype),
        "bproj": (s * jax.random.normal(ks[2], (1, dim))).astype(dtype),
    }


if __name__ == "__main__":
    B, N, dim, num_heads = 2, 8, 32, 4       # head_dim = 8

    key = jax.random.PRNGKey(0)
    kx, kp = jax.random.split(key)
    x = jax.random.normal(kx, (B, N, dim), dtype=jnp.float32)
    raw = init_params(kp, dim)

    prepared = prepare_params(raw, num_heads)          # one-time weight prep
    out = block_attn_forward(x, prepared, num_heads)   # block_b auto-chosen (=2 here)
    out = jax.block_until_ready(out)

    assert out.shape == (B, N, dim) and out.dtype == jnp.float32
    assert bool(jnp.all(jnp.isfinite(out)))

    ref = block_attn_reference(x, raw, num_heads)
    err = float(jnp.max(jnp.abs(out - ref)))
    assert err < 2e-2, f"max |err| vs reference = {err}"

    print("KERNEL_OK")
</pallas_src>

<mosaic_0001>
module attributes {stable_mosaic.version = 11 : i64} {
  func.func @block_attn_kernel(%arg0: i32, %arg1: memref<2x8x32xf32, #tpu.memory_space<vmem>>, %arg2: memref<1x32xf32, #tpu.memory_space<vmem>>, %arg3: memref<1x32xf32, #tpu.memory_space<vmem>>, %arg4: memref<32x32xbf16, #tpu.memory_space<vmem>>, %arg5: memref<32x32xbf16, #tpu.memory_space<vmem>>, %arg6: memref<32x32xbf16, #tpu.memory_space<vmem>>, %arg7: memref<32x32xbf16, #tpu.memory_space<vmem>>, %arg8: memref<1x32xf32, #tpu.memory_space<vmem>>, %arg9: memref<2x8x32xf32, #tpu.memory_space<vmem>>) attributes {dimension_semantics = [#tpu.dimension_semantics<parallel>], iteration_bounds = array<i64: 1>, scalar_prefetch = 0 : i64, scratch_operands = 0 : i64, tpu.core_type = #tpu.core_type<tc>, window_params = [{transform_indices = @transform_0, window_bounds = array<i64: 2, 8, 32>}, {pipeline_mode = #tpu.pipeline_mode<synchronous>, transform_indices = @transform_1, window_bounds = array<i64: 1, 32>}, {pipeline_mode = #tpu.pipeline_mode<synchronous>, transform_indices = @transform_2, window_bounds = array<i64: 1, 32>}, {pipeline_mode = #tpu.pipeline_mode<synchronous>, transform_indices = @transform_3, window_bounds = array<i64: 32, 32>}, {pipeline_mode = #tpu.pipeline_mode<synchronous>, transform_indices = @transform_4, window_bounds = array<i64: 32, 32>}, {pipeline_mode = #tpu.pipeline_mode<synchronous>, transform_indices = @transform_5, window_bounds = array<i64: 32, 32>}, {pipeline_mode = #tpu.pipeline_mode<synchronous>, transform_indices = @transform_6, window_bounds = array<i64: 32, 32>}, {pipeline_mode = #tpu.pipeline_mode<synchronous>, transform_indices = @transform_7, window_bounds = array<i64: 1, 32>}, {transform_indices = @transform_8, window_bounds = array<i64: 2, 8, 32>}]} {
    %c0 = arith.constant 0 : index
    %c0_0 = arith.constant 0 : index
    %c0_1 = arith.constant 0 : index
    %0 = vector.load %arg1[%c0, %c0_0, %c0_1] : memref<2x8x32xf32, #tpu.memory_space<vmem>>, vector<2x8x32xf32>
    %1 = vector.shape_cast %0 : vector<2x8x32xf32> to vector<16x32xf32>
    %cst = arith.constant dense<0.000000e+00> : vector<16xf32>
    %2 = vector.multi_reduction <add>, %1, %cst [1] : vector<16x32xf32> to vector<16xf32>
    %3 = vector.shape_cast %2 : vector<16xf32> to vector<16x1xf32>
    %cst_2 = arith.constant 3.200000e+01 : f32
    %4 = vector.broadcast %cst_2 : f32 to vector<16x1xf32>
    %5 = arith.divf %3, %4 : vector<16x1xf32>
    %6 = vector.broadcast %5 : vector<16x1xf32> to vector<16x32xf32>
    %7 = arith.subf %1, %6 : vector<16x32xf32>
    %8 = arith.mulf %7, %7 : vector<16x32xf32>
    %cst_3 = arith.constant dense<0.000000e+00> : vector<16xf32>
    %9 = vector.multi_reduction <add>, %8, %cst_3 [1] : vector<16x32xf32> to vector<16xf32>
    %10 = vector.shape_cast %9 : vector<16xf32> to vector<16x1xf32>
    %cst_4 = arith.constant 3.200000e+01 : f32
    %11 = vector.broadcast %cst_4 : f32 to vector<16x1xf32>
    %12 = arith.divf %10, %11 : vector<16x1xf32>
    %cst_5 = arith.constant 9.99999974E-6 : f32
    %13 = vector.broadcast %cst_5 : f32 to vector<16x1xf32>
    %14 = arith.addf %12, %13 : vector<16x1xf32>
    %15 = math.rsqrt %14 : vector<16x1xf32>
    %16 = vector.broadcast %15 : vector<16x1xf32> to vector<16x32xf32>
    %17 = arith.mulf %7, %16 : vector<16x32xf32>
    %c0_6 = arith.constant 0 : index
    %c0_7 = arith.constant 0 : index
    %18 = vector.load %arg2[%c0_6, %c0_7] : memref<1x32xf32, #tpu.memory_space<vmem>>, vector<1x32xf32>
    %19 = vector.shape_cast %18 : vector<1x32xf32> to vector<32xf32>
    %20 = vector.shape_cast %19 : vector<32xf32> to vector<1x32xf32>
    %21 = vector.broadcast %20 : vector<1x32xf32> to vector<16x32xf32>
    %22 = arith.mulf %17, %21 : vector<16x32xf32>
    %c0_8 = arith.constant 0 : index
    %c0_9 = arith.constant 0 : index
    %23 = vector.load %arg3[%c0_8, %c0_9] : memref<1x32xf32, #tpu.memory_space<vmem>>, vector<1x32xf32>
    %24 = vector.shape_cast %23 : vector<1x32xf32> to vector<32xf32>
    %25 = vector.shape_cast %24 : vector<32xf32> to vector<1x32xf32>
    %26 = vector.broadcast %25 : vector<1x32xf32> to vector<16x32xf32>
    %27 = arith.addf %22, %26 : vector<16x32xf32>
    %28 = arith.truncf %27 : vector<16x32xf32> to vector<16x32xbf16>
    %c0_10 = arith.constant 0 : index
    %c0_11 = arith.constant 0 : index
    %29 = vector.load %arg4[%c0_10, %c0_11] : memref<32x32xbf16, #tpu.memory_space<vmem>>, vector<32x32xbf16>
    %cst_12 = arith.constant dense<0.000000e+00> : vector<16x32xf32>
    %30 = tpu.matmul %28, %29, %cst_12 {dimension_numbers = #tpu.dot_dimension_numbers<[1], [0], [0], [1], [0, 0, 1, 1], [], []>} : vector<16x32xbf16>, vector<32x32xbf16>, vector<16x32xf32> -> vector<16x32xf32>
    %c0_13 = arith.constant 0 : index
    %c0_14 = arith.constant 0 : index
    %31 = vector.load %arg5[%c0_13, %c0_14] : memref<32x32xbf16, #tpu.memory_space<vmem>>, vector<32x32xbf16>
    %cst_15 = arith.constant dense<0.000000e+00> : vector<16x32xf32>
    %32 = tpu.matmul %28, %31, %cst_15 {dimension_numbers = #tpu.dot_dimension_numbers<[1], [0], [0], [1], [0, 0, 1, 1], [], []>} : vector<16x32xbf16>, vector<32x32xbf16>, vector<16x32xf32> -> vector<16x32xf32>
    %c0_16 = arith.constant 0 : index
    %c0_17 = arith.constant 0 : index
    %33 = vector.load %arg6[%c0_16, %c0_17] : memref<32x32xbf16, #tpu.memory_space<vmem>>, vector<32x32xbf16>
    %cst_18 = arith.constant dense<0.000000e+00> : vector<16x32xf32>
    %34 = tpu.matmul %28, %33, %cst_18 {dimension_numbers = #tpu.dot_dimension_numbers<[1], [0], [0], [1], [0, 0, 1, 1], [], []>} : vector<16x32xbf16>, vector<32x32xbf16>, vector<16x32xf32> -> vector<16x32xf32>
    %35 = arith.truncf %30 : vector<16x32xf32> to vector<16x32xbf16>
    %36 = vector.shape_cast %35 : vector<16x32xbf16> to vector<16x4x8xbf16>
    %37 = tpu.transpose %36, [1, 0, 2] : vector<16x4x8xbf16> -> vector<4x16x8xbf16>
    %38 = vector.shape_cast %37 : vector<4x16x8xbf16> to vector<8x8x8xbf16>
    %39 = arith.truncf %32 : vector<16x32xf32> to vector<16x32xbf16>
    %40 = vector.shape_cast %39 : vector<16x32xbf16> to vector<16x4x8xbf16>
    %41 = tpu.transpose %40, [1, 0, 2] : vector<16x4x8xbf16> -> vector<4x16x8xbf16>
    %42 = vector.shape_cast %41 : vector<4x16x8xbf16> to vector<8x8x8xbf16>
    %43 = arith.truncf %34 : vector<16x32xf32> to vector<16x32xbf16>
    %44 = vector.shape_cast %43 : vector<16x32xbf16> to vector<16x4x8xbf16>
    %45 = tpu.transpose %44, [1, 0, 2] : vector<16x4x8xbf16> -> vector<4x16x8xbf16>
    %46 = vector.shape_cast %45 : vector<4x16x8xbf16> to vector<8x8x8xbf16>
    "tpu.trace_start"() <{level = 10 : i32, message = "zqd,zkd->zqk"}> : () -> ()
    %cst_19 = arith.constant dense<0.000000e+00> : vector<8x8x8xf32>
    %47 = tpu.matmul %38, %42, %cst_19 {dimension_numbers = #tpu.dot_dimension_numbers<[2], [2], [1], [1], [0, 0, 0, 1, 1, 1], [0], [0]>} : vector<8x8x8xbf16>, vector<8x8x8xbf16>, vector<8x8x8xf32> -> vector<8x8x8xf32>
    "tpu.trace_stop"() : () -> ()
    %cst_20 = arith.constant dense<0xFF800000> : vector<8x8xf32>
    %48 = vector.multi_reduction <maximumf>, %47, %cst_20 [2] : vector<8x8x8xf32> to vector<8x8xf32>
    %49 = vector.shape_cast %48 : vector<8x8xf32> to vector<8x8x1xf32>
    %50 = vector.broadcast %49 : vector<8x8x1xf32> to vector<8x8x8xf32>
    %51 = arith.subf %47, %50 : vector<8x8x8xf32>
    %52 = math.exp %51 : vector<8x8x8xf32>
    %cst_21 = arith.constant dense<0.000000e+00> : vector<8x8xf32>
    %53 = vector.multi_reduction <add>, %52, %cst_21 [2] : vector<8x8x8xf32> to vector<8x8xf32>
    %54 = arith.truncf %52 : vector<8x8x8xf32> to vector<8x8x8xbf16>
    "tpu.trace_start"() <{level = 10 : i32, message = "zqk,zkd->zqd"}> : () -> ()
    %cst_22 = arith.constant dense<0.000000e+00> : vector<8x8x8xf32>
    %55 = tpu.matmul %54, %46, %cst_22 {dimension_numbers = #tpu.dot_dimension_numbers<[2], [1], [1], [2], [0, 0, 0, 1, 1, 2], [0], [0]>} : vector<8x8x8xbf16>, vector<8x8x8xbf16>, vector<8x8x8xf32> -> vector<8x8x8xf32>
    "tpu.trace_stop"() : () -> ()
    %cst_23 = arith.constant 1.000000e+00 : f32
    %56 = vector.broadcast %cst_23 : f32 to vector<8x8xf32>
    %57 = arith.divf %56, %53 : vector<8x8xf32>
    %58 = vector.shape_cast %57 : vector<8x8xf32> to vector<8x8x1xf32>
    %59 = vector.broadcast %58 : vector<8x8x1xf32> to vector<8x8x8xf32>
    %60 = arith.mulf %55, %59 : vector<8x8x8xf32>
    %61 = arith.truncf %60 : vector<8x8x8xf32> to vector<8x8x8xbf16>
    %62 = vector.shape_cast %61 : vector<8x8x8xbf16> to vector<4x16x8xbf16>
    %63 = tpu.transpose %62, [1, 0, 2] : vector<4x16x8xbf16> -> vector<16x4x8xbf16>
    %64 = vector.shape_cast %63 : vector<16x4x8xbf16> to vector<16x32xbf16>
    %c0_24 = arith.constant 0 : index
    %c0_25 = arith.constant 0 : index
    %65 = vector.load %arg7[%c0_24, %c0_25] : memref<32x32xbf16, #tpu.memory_space<vmem>>, vector<32x32xbf16>
    %cst_26 = arith.constant dense<0.000000e+00> : vector<16x32xf32>
    %66 = tpu.matmul %64, %65, %cst_26 {dimension_numbers = #tpu.dot_dimension_numbers<[1], [0], [0], [1], [0, 0, 1, 1], [], []>} : vector<16x32xbf16>, vector<32x32xbf16>, vector<16x32xf32> -> vector<16x32xf32>
    %c0_27 = arith.constant 0 : index
    %c0_28 = arith.constant 0 : index
    %67 = vector.load %arg8[%c0_27, %c0_28] : memref<1x32xf32, #tpu.memory_space<vmem>>, vector<1x32xf32>
    %68 = vector.shape_cast %67 : vector<1x32xf32> to vector<32xf32>
    %69 = vector.shape_cast %68 : vector<32xf32> to vector<1x32xf32>
    %70 = vector.broadcast %69 : vector<1x32xf32> to vector<16x32xf32>
    %71 = arith.addf %66, %70 : vector<16x32xf32>
    %72 = arith.addf %1, %71 : vector<16x32xf32>
    %73 = vector.shape_cast %72 : vector<16x32xf32> to vector<2x8x32xf32>
    %c0_29 = arith.constant 0 : index
    %c0_30 = arith.constant 0 : index
    %c0_31 = arith.constant 0 : index
    %74 = vector.load %arg9[%c0_29, %c0_30, %c0_31] : memref<2x8x32xf32, #tpu.memory_space<vmem>>, vector<2x8x32xf32>
    tpu.vector_store %arg9[%c0_29, %c0_30, %c0_31], %73 {strides = array<i32>} : memref<2x8x32xf32, #tpu.memory_space<vmem>>, vector<2x8x32xf32>,
    return
  }
  func.func @transform_0(%arg0: i32) -> (i32, i32, i32) {
    %c0_i32 = arith.constant 0 : i32
    %c0_i32_0 = arith.constant 0 : i32
    %c0_i32_1 = arith.constant 0 : i32
    return %arg0, %c0_i32, %c0_i32_0 : i32, i32, i32
  }
  func.func @transform_1(%arg0: i32) -> (i32, i32) {
    %c0_i32 = arith.constant 0 : i32
    %c0_i32_0 = arith.constant 0 : i32
    %c0_i32_1 = arith.constant 0 : i32
    return %c0_i32, %c0_i32_0 : i32, i32
  }
  func.func @transform_2(%arg0: i32) -> (i32, i32) {
    %c0_i32 = arith.constant 0 : i32
    %c0_i32_0 = arith.constant 0 : i32
    %c0_i32_1 = arith.constant 0 : i32
    return %c0_i32, %c0_i32_0 : i32, i32
  }
  func.func @transform_3(%arg0: i32) -> (i32, i32) {
    %c0_i32 = arith.constant 0 : i32
    %c0_i32_0 = arith.constant 0 : i32
    %c0_i32_1 = arith.constant 0 : i32
    return %c0_i32, %c0_i32_0 : i32, i32
  }
  func.func @transform_4(%arg0: i32) -> (i32, i32) {
    %c0_i32 = arith.constant 0 : i32
    %c0_i32_0 = arith.constant 0 : i32
    %c0_i32_1 = arith.constant 0 : i32
    return %c0_i32, %c0_i32_0 : i32, i32
  }
  func.func @transform_5(%arg0: i32) -> (i32, i32) {
    %c0_i32 = arith.constant 0 : i32
    %c0_i32_0 = arith.constant 0 : i32
    %c0_i32_1 = arith.constant 0 : i32
    return %c0_i32, %c0_i32_0 : i32, i32
  }
  func.func @transform_6(%arg0: i32) -> (i32, i32) {
    %c0_i32 = arith.constant 0 : i32
    %c0_i32_0 = arith.constant 0 : i32
    %c0_i32_1 = arith.constant 0 : i32
    return %c0_i32, %c0_i32_0 : i32, i32
  }
  func.func @transform_7(%arg0: i32) -> (i32, i32) {
    %c0_i32 = arith.constant 0 : i32
    %c0_i32_0 = arith.constant 0 : i32
    %c0_i32_1 = arith.constant 0 : i32
    return %c0_i32, %c0_i32_0 : i32, i32
  }
  func.func @transform_8(%arg0: i32) -> (i32, i32, i32) {
    %c0_i32 = arith.constant 0 : i32
    %c0_i32_0 = arith.constant 0 : i32
    %c0_i32_1 = arith.constant 0 : i32
    return %arg0, %c0_i32, %c0_i32_0 : i32, i32, i32
  }
}

</mosaic_0001>

<bundles_post_ra>
// kernel: tpu_custom_call.1
= control target key start
LH: loop header
LB: loop body
LE: loop exit
PB: predicated region body
PF: predicated region fallthrough
CT: control target
= control target key end

     0   :  { %13 = vsyncpa [#allocation3], 0  ;;  %s3318_s0 = inlined_call_operand.hbm [shape: f32[2,8,32], index: 0, kind: input, shape index: {}]   ;;  %s3319_s1 = inlined_call_operand.vmem [shape: f32[1,32], index: 1, kind: input, shape index: {}]   ;;  %s3320_s2 = inlined_call_operand.vmem [shape: f32[1,32], index: 2, kind: input, shape index: {}]   ;;  %s3321_s3 = inlined_call_operand.hbm [shape: bf16[32,32], index: 3, kind: input, shape index: {}]   ;;  %s3322_s4 = inlined_call_operand.hbm [shape: bf16[32,32], index: 4, kind: input, shape index: {}]   ;;  %s3323_s5 = inlined_call_operand.vmem [shape: bf16[32,32], index: 5, kind: input, shape index: {}]   ;;  %s3324_s6 = inlined_call_operand.hbm [shape: bf16[32,32], index: 6, kind: input, shape index: {}]   ;;  %s3325_s7 = inlined_call_operand.vmem [shape: f32[1,32], index: 7, kind: input, shape index: {}]   ;;  %s3326_s8 = inlined_call_operand.hbm [shape: f32[2,8,32], index: 8, kind: output, shape index: {}]  }
   0x1   :  { %14 = vsyncpa [#allocation6], 0 }
   0x2   :  { %15 = vsyncpa [#allocation9], 0 }
   0x3   :  { %16 = vsyncpa [#allocation4], 0  ;;  %s2847_s27 = smov [#allocation5]   ;;  %s2729_s9 = scalar_lea.hbm %s3321_s3, 256 }
   0x4   :  { %s38_s28 = sshll.u32 %s2847_s27, 4  ;;  %p2730_p0 = scmp.ne.s32.totalorder %s3321_s3, %s2729_s9  ;;  %s39_s28 = int_to_ptr.vmem [resolvable:$true] %s38_s28 }
   0x5   :  { %p2733_p1 = scmp.lt.u32.totalorder %s2729_s9, %s3321_s3 }
   0x7   :  { %p2735_p2 = pnand %p2733_p1, %p2730_p0 }
   0x9   :  { %2738 = shalt.err (!%p2735_p2)
}
   0xa   :  { %s2739_s14 = scalar_lea.vmem %s39_s28, 256  ;;  %p2744_p4 = scmp.lt.s32.totalorder %s39_s28, %s39_s28 }
   0xb   :  { %p2740_p3 = scmp.ne.s32.totalorder %s39_s28, %s2739_s14  ;;  %p2745_p5 = scmp.lt.s32.totalorder %s2739_s14, %s2739_s14 }
   0xd   :  { %p2746_p6 = por %p2745_p5, %p2744_p4 }
   0xf   :  { %p2747_p7 = pnand %p2746_p6, %p2740_p3 }
  0x11   :  { %2750 = shalt.err (!%p2747_p7)
}
  0x12   :  { %s2848_s15 = smov 64   ;;  %s2849_s16 = smov 4  }
  0x13   :  { %44 = dma.hbm_to_vmem [thread:$0]  %s3321_s3, 256, %s39_s28, [#allocation6], %s2848_s15, %s2848_s15, %s2849_s16  }
  0x14   :  { %s2850_s19 = smov [#allocation2]   ;;  %s2751_s23 = scalar_lea.hbm %s3318_s0, 256 }
  0x15   :  { %s22_s20 = sshll.u32 %s2850_s19, 4  ;;  %p2752_p8 = scmp.ne.s32.totalorder %s3318_s0, %s2751_s23  ;;  %s23_s20 = int_to_ptr.vmem [resolvable:$true] %s22_s20 }
  0x16   :  { %p2755_p9 = scmp.lt.u32.totalorder %s2751_s23, %s3318_s0 }
  0x18   :  { %p2757_p10 = pnand %p2755_p9, %p2752_p8 }
  0x1a   :  { %2760 = shalt.err (!%p2757_p10)
}
  0x1b   :  { %s2761_s29 = scalar_lea.vmem %s23_s20, 256  ;;  %p2766_p12 = scmp.lt.s32.totalorder %s23_s20, %s23_s20 }
  0x1c   :  { %p2762_p11 = scmp.ne.s32.totalorder %s23_s20, %s2761_s29  ;;  %p2767_p13 = scmp.lt.s32.totalorder %s2761_s29, %s2761_s29 }
  0x1e   :  { %p2768_p0 = por %p2767_p13, %p2766_p12 }
  0x20   :  { %p2769_p1 = pnand %p2768_p0, %p2762_p11 }
  0x22   :  { %2772 = shalt.err (!%p2769_p1)
}
  0x23   :  { %s2851_s3 = smov 128   ;;  %s2852_s28 = smov 8  }
  0x24   :  { %28 = dma.hbm_to_vmem [thread:$0]  %s3318_s0, 256, %s23_s20, [#allocation3], %s2851_s3, %s2851_s3, %s2852_s28  }
  0x25   :  { %s2853_s10 = smov [#allocation7]   ;;  %s2854_s12 = smov [#allocation8]  }
  0x26   :  { %s50_s11 = sshll.u32 %s2853_s10, 4  ;;  %s64_s13 = sshll.u32 %s2854_s12, 4  ;;  %s51_s11 = int_to_ptr.vmem [resolvable:$true] %s50_s11  ;;  %s2941_s13 = int_to_ptr.vmem [resolvable:$true] %s64_s13 }
  0x27   :  { %s2773_s18 = scalar_lea.hbm %s3322_s4, 256 }
  0x28   :  { %p2774_p2 = scmp.ne.s32.totalorder %s3322_s4, %s2773_s18  ;;  %p2777_p3 = scmp.lt.u32.totalorder %s2773_s18, %s3322_s4 }
  0x2a   :  { %p2779_p4 = pnand %p2777_p3, %p2774_p2 }
  0x2c   :  { %2782 = shalt.err (!%p2779_p4)
}
  0x2d   :  { %s2783_s0 = scalar_lea.vmem %s51_s11, 256  ;;  %p2788_p6 = scmp.lt.s32.totalorder %s51_s11, %s51_s11 }
  0x2e   :  { %p2784_p5 = scmp.ne.s32.totalorder %s51_s11, %s2783_s0  ;;  %p2789_p7 = scmp.lt.s32.totalorder %s2783_s0, %s2783_s0 }
  0x30   :  { %p2790_p8 = por %p2789_p7, %p2788_p6 }
  0x32   :  { %p2791_p9 = pnand %p2790_p8, %p2784_p5 }
  0x34   :  { %2794 = shalt.err (!%p2791_p9)
}
  0x35   :  { %56 = dma.hbm_to_vmem [thread:$0]  %s3322_s4, 256, %s51_s11, [#allocation6], %s2848_s15, %s2848_s15, %s2849_s16  }
  0x36   :  { %s2795_s27 = scalar_lea.hbm %s3324_s6, 256 }
  0x37   :  { %p2796_p10 = scmp.ne.s32.totalorder %s3324_s6, %s2795_s27  ;;  %p2799_p11 = scmp.lt.u32.totalorder %s2795_s27, %s3324_s6 }
  0x39   :  { %p2801_p12 = pnand %p2799_p11, %p2796_p10 }
  0x3b   :  { %2804 = shalt.err (!%p2801_p12)
}
  0x3c   :  { %s2805_s12 = scalar_lea.vmem %s2941_s13, 256  ;;  %p2810_p0 = scmp.lt.s32.totalorder %s2941_s13, %s2941_s13 }
  0x3d   :  { %p2806_p13 = scmp.ne.s32.totalorder %s2941_s13, %s2805_s12  ;;  %p2811_p1 = scmp.lt.s32.totalorder %s2805_s12, %s2805_s12 }
  0x3f   :  { %p2812_p2 = por %p2811_p1, %p2810_p0 }
  0x41   :  { %p2813_p3 = pnand %p2812_p2, %p2806_p13 }
  0x43   :  { %2816 = shalt.err (!%p2813_p3)
}
  0x44   :  { %70 = dma.hbm_to_vmem [thread:$0]  %s3324_s6, 256, %s2941_s13, [#allocation9], %s2848_s15, %s2848_s15, %s2849_s16  }
  0x45   :  { %2839 = dma.done.wait [#allocation3], 256  }
  0x46   :  { %2840 = vsyncadd [#allocation3], 4294967040 }
  0x47   :  { %2841 = dma.done.wait [#allocation6], 512  }
  0x48   :  { %2842 = vsyncadd [#allocation6], 4294966784 }
  0x49   :  { %2843 = dma.done.wait [#allocation9], 256  }
  0x4a   :  { %2844 = vsyncadd [#allocation9], 4294967040  ;;  %vm88_vm0 = vcmask 261120   ;;  %v86_v0 = vld [vmem:[#allocation2] sm:$0xff]  ;;  %v87_v1 = vld [vmem:[#allocation2 + $0x8] sm:$0xff]  ;;  %v2855_v16 = vmov 0.0   ;;  %v343_v55 = vlaneseq }
  0x4b   :  { %v89_v2 = vsel %vm88_vm0, %v86_v0, 0.0  ;;  %v92_v3 = vsel %vm88_vm0, %v87_v1, 0.0  ;;  %v2683_v14 = vld [vmem:[#allocation5] sm:$0xff]   ;;  %v2684_v15 = vld [vmem:[#allocation7] sm:$0xff]   ;;  %2536 = vmatprep.subr.bf16.mxu0 %v2855_v16  ;;  %2544 = vmatprep.subr.bf16.mxu1 %v2855_v16  ;;  %v2685_v17 = vld [vmem:[#allocation5 + $0x8] sm:$0xff]   ;;  %vm2856_vm1 = vmmov 0  }
  0x4c   :  { %90 = vadd.xlane.f32.xlu0 %v89_v2  ;;  %2537 = vmatpush3.bf16.msra.mxu0 %v2683_v14  ;;  %v2686_v18 = vld [vmem:[#allocation7 + $0x8] sm:$0xff]   ;;  %v2417_v27 = vld [vmem:[%s3319_s1] ss:$0 sm:$0xff]  ;;  %s2859_s19 = smov 104   ;;  %v2860_v53 = vmov 1983009808  }
  0x4d   :  { %2545 = vmatpush3.bf16.msra.mxu1 %v2684_v15  ;;  %2538 = vmatprep.subr.bf16.mxu0 %v2855_v16  ;;  %v2418_v31 = vld [vmem:[%s3320_s2] ss:$0 sm:$0xff]  ;;  %v2688_v37 = vld [vmem:[%s3323_s5 + $0x8] sm:$0xff]   ;;  %s2857_s2 = smov 112   ;;  %v341_v54 = vunpack.c.l.s4 %v2860_v53  ;;  %v344_v57 = vshrl.u32 %v343_v55, 7  ;;  %v2862_v61 = vmov 0  }
  0x4e   :  { %2546 = vmatprep.subr.bf16.mxu1 %v2855_v16  ;;  %2540 = vmatprep.mubr.msk.bf16.mxu0 %vm2856_vm1, %v2855_v16  ;;  %v2687_v35 = vld [vmem:[%s3323_s5] sm:$0xff]   ;;  %s2858_s5 = smov 120   ;;  %v2861_v58 = vmov 1934713408   ;;  %v3029_v62 = vpack.i.b16 %v2862_v61, %v2862_v61  ;;  %vm1167_vm2 = vcmask 64512   ;;  %vm1619_vm3 = vcmask 1043456  }
  0x4f   :  { %2548 = vmatprep.mubr.msk.bf16.mxu1 %vm2856_vm1, %v2855_v16  ;;  %v342_v56 = vunpack.c.0.s8 %v341_v54  ;;  %v372_v59 = vunpack.c.l.s4 %v2861_v58  ;;  %s2863_s21 = smov 16   ;;  %s2864_s22 = smov 24   ;;  %vm2322_vm4 = vcmask 130048   ;;  %vm2325_vm5 = vcmask 195584  }
  0x50   :  { %93 = vadd.xlane.f32.xlu0 %v92_v3  ;;  %2539 = vmatpush3.bf16.msra.mxu0 %v2685_v17  ;;  %s2865_s20 = smov [#allocation10]  }
  0x51   :  { %2547 = vmatpush3.bf16.msra.mxu1 %v2686_v18  ;;  %2552 = vmatprep.subr.bf16.mxu0 %v2855_v16  ;;  %v3031_v2 = vsub.s32 %v342_v56, %v344_v57  ;;  %s2403_s24 = sshll.u32 %s2865_s20, 4  ;;  %s2404_s24 = int_to_ptr.vmem [resolvable:$true] %s2403_s24 }
  0x52   :  { %2560 = vmatprep.subr.bf16.mxu1 %v2855_v16  ;;  %s2817_s25 = scalar_lea.vmem %s2404_s24, 256  ;;  %p2822_p5 = scmp.lt.s32.totalorder %s2404_s24, %s2404_s24 }
  0x53   :  { %p2818_p4 = scmp.ne.s32.totalorder %s2404_s24, %s2817_s25  ;;  %p2823_p6 = scmp.lt.s32.totalorder %s2817_s25, %s2817_s25 }
  0x55   :  { %p2824_p7 = por %p2823_p6, %p2822_p5 }
  0x57   :  { %p2825_p8 = pnand %p2824_p7, %p2818_p4 }
  0xd9   :  { %v91_v4 = vpop.xlane.xlu0 %90 }
  0xda   :  { %v96_v5 = vmul.f32 0.03125, %v91_v4  ;;  %v373_v4 = vunpack.c.0.s8 %v372_v59 }
  0xdc   :  { %v98_v6 = vsub.f32 %v86_v0, %v96_v5 }
  0xdd   :  { %v94_v7 = vpop.xlane.xlu0 %93 }
  0xde   :  { %v97_v8 = vmul.f32 0.03125, %v94_v7  ;;  %v100_v9 = vmul.f32 %v98_v6, %v98_v6 }
  0xe0   :  { %v99_v10 = vsub.f32 %v87_v1, %v97_v8  ;;  %v102_v11 = vsel %vm88_vm0, %v100_v9, 0.0 }
  0xe1   :  { %103 = vadd.xlane.f32.xlu1 %v102_v11 }
  0xe2   :  { %v101_v12 = vmul.f32 %v99_v10, %v99_v10 }
  0xe4   :  { %v105_v13 = vsel %vm88_vm0, %v101_v12, 0.0  ;;  %v3035_v12 = vsub.s32 %v373_v4, %v344_v57 }
  0xe5   :  { %106 = vadd.xlane.f32.xlu1 %v105_v13 }
 0x16e   :  { %v104_v19 = vpop.xlane.xlu1 %103 }
 0x16f   :  { %v108_v20 = vmul.f32 0.03125, %v104_v19 }
 0x171   :  { %v110_v21 = vadd.f32 1e-05, %v108_v20 }
 0x172   :  { %v107_v22 = vpop.xlane.xlu1 %106 }
 0x173   :  { %2691 = vrsqrt.f32 %v110_v21  ;;  %v109_v23 = vmul.f32 0.03125, %v107_v22 }
 0x175   :  { %v111_v24 = vadd.f32 1e-05, %v109_v23 }
 0x177   :  { %2693 = vrsqrt.f32 %v111_v24 }
 0x17d   :  { %v2692_v25 = vpop.eup %2691 }
 0x17e   :  { %v114_v26 = vmul.f32 %v2692_v25, %v98_v6 }
 0x180   :  { %v123_v30 = vmul.f32 %v2417_v27, %v114_v26 }
 0x181   :  { %v2694_v28 = vpop.eup %2693 }
 0x182   :  { %v115_v29 = vmul.f32 %v2694_v28, %v99_v10  ;;  %v132_v33 = vadd.f32 %v2418_v31, %v123_v30 }
 0x184   :  { %v124_v32 = vmul.f32 %v2417_v27, %v115_v29 }
 0x186   :  { %v133_v34 = vadd.f32 %v2418_v31, %v124_v32 }
 0x188   :  { %v134_v36 = vpack.c.bf16 %v133_v34, %v132_v33 }
 0x18a   :  { %2541 = vmatmul.mubr.msk.bf16.vlgmr.msra.gmra.mrb[0].mxu0 %vm88_vm0, %v134_v36  ;;  %2549 = vmatmul.mubr.msk.bf16.vlgmr.msra.gmra.mrb[0].mxu1 %vm88_vm0, %v134_v36 }
 0x18b   :  { %2553 = vmatpush3.bf16.msra.mxu0 %v2687_v35  ;;  %2556 = vmatprep.mubr.msk.bf16.mxu0 %vm2856_vm1, %v2855_v16 }
 0x18c   :  { %2554 = vmatprep.subr.bf16.mxu0 %v2855_v16  ;;  %2562 = vmatprep.mubr.msk.bf16.mxu1 %vm2856_vm1, %v2855_v16 }
 0x18f   :  { %2555 = vmatpush3.bf16.msra.mxu0 %v2688_v37 }
 0x190   :  { %2566 = vmatprep.subr.bf16.mxu0 %v2855_v16 }
 0x192   :  { %2557 = vmatmul.mubr.msk.bf16.vlgmr.msra.gmra.mrb[4].mxu0 %vm88_vm0, %v134_v36 }
 0x193   :  { %2568 = vmatprep.mubr.msk.bf16.mxu0 %vm2856_vm1, %v2855_v16 }
 0x25d   :  { %v188_v38 = vpop.f32.mrb[0].mxu0  ;;  %v245_v39 = vpop.f32.mrb[0].mxu1 }
 0x25e   :  { %v2542_v40 = vpop.f32.mrb[1].mxu0  ;;  %v2550_v41 = vpop.f32.mrb[1].mxu1 }
 0x25f   :  { %v191_v42 = vpop.f32.mrb[2].mxu0  ;;  %v248_v43 = vpop.f32.mrb[2].mxu1 }
 0x260   :  { %v3015_v44 = vpack.c.bf16 %v191_v42, %v188_v38  ;;  %v599_v45 = vpack.c.bf16 %v248_v43, %v245_v39  ;;  %v2543_v46 = vpop.f32.mrb[3].mxu0  ;;  %v2551_v47 = vpop.f32.mrb[3].mxu1 }
 0x262   :  { %603 = vrot.lane.b32.xlu1 %v599_v45, %s2857_s2  ;;  %601 = vrot.lane.b32.xlu0 %v599_v45, %s2858_s5  ;;  %v611_v3 = vshrl.u32 %v599_v45, 16  ;;  %v321_v39 = vshrl.u32 %v3015_v44, 16 }
 0x265   :  { %v302_v48 = vpop.f32.mrb[4].mxu0 }
 0x266   :  { %605 = vrot.lane.b32.xlu1 %v599_v45, %s2859_s19  ;;  %313 = vrot.lane.b32.xlu0 %v3015_v44, %s2857_s2  ;;  %v2558_v49 = vpop.f32.mrb[5].mxu0 }
 0x267   :  { %v305_v50 = vpop.f32.mrb[6].mxu0 }
 0x268   :  { %v3021_v51 = vpack.c.bf16 %v305_v50, %v302_v48  ;;  %v2559_v52 = vpop.f32.mrb[7].mxu0 }
 0x26a   :  { %311 = vrot.lane.b32.xlu1 %v3015_v44, %s2858_s5  ;;  %885 = vrot.lane.b32.xlu0 %v3021_v51, %s2858_s5 }
 0x26e   :  { %315 = vrot.lane.b32.xlu1 %v3015_v44, %s2859_s19 }
 0x2d4   :  { %v604_v60 = vpop.permute.xlu1 %603  ;;  %v602_v63 = vpop.permute.xlu0 %601 }
 0x2d5   :  { %v609_v0 = vpack.i.b16 %v602_v63, %v599_v45  ;;  %v612_v1 = vshrl.u32 %v602_v63, 16  ;;  %v619_v9 = vshrl.u32 %v604_v60, 16 }
 0x2d7   :  { %v623_v5 = vcombine.high %v609_v0, %v3029_v62  ;;  %v613_v7 = vpack.i.b16 %v612_v1, %v611_v3  ;;  %v630_v11 = vrot.slane %v609_v0, %v3031_v2 }
 0x2d8   :  { %v606_v6 = vpop.permute.xlu1 %605  ;;  %v314_v43 = vpop.permute.xlu0 %313 }
 0x2d9   :  { %v617_v8 = vpack.i.b16 %v606_v6, %v604_v60  ;;  %v620_v10 = vshrl.u32 %v606_v6, 16  ;;  %v637_v15 = vrot.slane %v623_v5, %v3031_v2  ;;  %v689_v18 = vcombine.high %v613_v7, %v3029_v62 }
 0x2da   :  { %v696_v22 = vrot.slane %v613_v7, %v3031_v2  ;;  %v329_v54 = vshrl.u32 %v314_v43, 16 }
 0x2db   :  { %v638_v13 = vcombine.high %v617_v8, %v3029_v62  ;;  %v645_v14 = vrot.slane %v617_v8, %v3031_v2  ;;  %v621_v17 = vpack.i.b16 %v620_v10, %v619_v9  ;;  %v703_v33 = vrot.slane %v689_v18, %v3031_v2 }
 0x2dc   :  { %v312_v25 = vpop.permute.xlu1 %311 }
 0x2dd   :  { %v652_v19 = vrot.slane %v638_v13, %v3031_v2  ;;  %v653_v20 = vcombine.low %v630_v11, %v645_v14  ;;  %v654_v21 = vcombine.high %v630_v11, %v645_v14  ;;  %v704_v23 = vcombine.high %v621_v17, %v3029_v62 }
 0x2de   :  { %v711_v24 = vrot.slane %v621_v17, %v3031_v2  ;;  %v322_v36 = vshrl.u32 %v312_v25, 16  ;;  %v319_v45 = vpack.i.b16 %v312_v25, %v3015_v44 }
 0x2df   :  { %v661_v26 = vrot.slane %v653_v20, %v3035_v12  ;;  %v668_v27 = vrot.slane %v654_v21, %v3035_v12  ;;  %v669_v28 = vcombine.low %v637_v15, %v652_v19  ;;  %v670_v29 = vcombine.high %v637_v15, %v652_v19 }
 0x2e0   :  { %v718_v30 = vrot.slane %v704_v23, %v3031_v2  ;;  %v719_v31 = vcombine.low %v696_v22, %v711_v24  ;;  %v720_v32 = vcombine.high %v696_v22, %v711_v24  ;;  %v323_v50 = vpack.i.b16 %v322_v36, %v321_v39  ;;  %v316_v52 = vpop.permute.xlu1 %315 }
 0x2e1   :  { %v677_v34 = vrot.slane %v669_v28, %v3035_v12  ;;  %v684_v35 = vrot.slane %v670_v29, %v3035_v12  ;;  %v755_v42 = vcombine.low %v661_v26, %v668_v27  ;;  %v2440_v46 = vcombine.high %v661_v26, %v668_v27 }
 0x2e2   :  { %v727_v37 = vrot.slane %v719_v31, %v3035_v12  ;;  %v734_v38 = vrot.slane %v720_v32, %v3035_v12  ;;  %v735_v40 = vcombine.low %v703_v33, %v718_v30  ;;  %v736_v41 = vcombine.high %v703_v33, %v718_v30 }
 0x2e3   :  { %v771_v47 = vcombine.low %v677_v34, %v684_v35  ;;  %v2441_v48 = vcombine.high %v677_v34, %v684_v35  ;;  %v3058_v57 = vrot.slane %v755_v42, %v3031_v2  ;;  %v339_v58 = vcombine.high %v319_v45, %v3029_v62 }
 0x2e4   :  { %v805_v49 = vcombine.low %v727_v37, %v734_v38  ;;  %v2442_v53 = vcombine.high %v727_v37, %v734_v38  ;;  %v743_v55 = vrot.slane %v735_v40, %v3035_v12  ;;  %v750_v56 = vrot.slane %v736_v41, %v3035_v12 }
 0x2e5   :  { %v3062_v59 = vrot.slane %v2440_v46, %v3031_v2  ;;  %v778_v44 = vrot.slane %v771_v47, %v3031_v2  ;;  %v327_v60 = vpack.i.b16 %v316_v52, %v314_v43  ;;  %v330_v63 = vshrl.u32 %v316_v52, 16 }
 0x2e6   :  { %v786_v0 = vrot.slane %v2441_v48, %v3031_v2  ;;  %v812_v1 = vrot.slane %v805_v49, %v3031_v2  ;;  %v346_v3 = vrot.slane %v319_v45, %v3031_v2  ;;  %v405_v4 = vcombine.high %v323_v50, %v3029_v62 }
 0x2e7   :  { %v820_v5 = vrot.slane %v2442_v53, %v3031_v2  ;;  %v331_v6 = vpack.i.b16 %v330_v63, %v329_v54  ;;  %v354_v7 = vcombine.high %v327_v60, %v3029_v62  ;;  %v361_v8 = vrot.slane %v327_v60, %v3031_v2 }
 0x2e8   :  { %v821_v9 = vcombine.low %v743_v55, %v750_v56  ;;  %v2443_v10 = vcombine.high %v743_v55, %v750_v56  ;;  %v353_v11 = vrot.slane %v339_v58, %v3031_v2  ;;  %v412_v13 = vrot.slane %v323_v50, %v3031_v2 }
 0x2e9   :  { %v368_v14 = vrot.slane %v354_v7, %v3031_v2  ;;  %v369_v15 = vcombine.low %v346_v3, %v361_v8  ;;  %v370_v17 = vcombine.high %v346_v3, %v361_v8  ;;  %v420_v18 = vcombine.high %v331_v6, %v3029_v62 }
 0x2ea   :  { %v419_v19 = vrot.slane %v405_v4, %v3031_v2  ;;  %v427_v20 = vrot.slane %v331_v6, %v3031_v2  ;;  %v787_v21 = vcombine.low %v3058_v57, %v3062_v59  ;;  %v795_v22 = vcombine.low %v778_v44, %v786_v0 }
 0x2eb   :  { %v377_v23 = vrot.slane %v369_v15, %v3035_v12  ;;  %v384_v24 = vrot.slane %v370_v17, %v3035_v12  ;;  %v385_v25 = vcombine.low %v353_v11, %v368_v14  ;;  %v386_v26 = vcombine.high %v353_v11, %v368_v14 }
 0x2ec   :  { %v434_v27 = vrot.slane %v420_v18, %v3031_v2  ;;  %v435_v28 = vcombine.low %v412_v13, %v427_v20  ;;  %v436_v29 = vcombine.high %v412_v13, %v427_v20  ;;  %v828_v30 = vrot.slane %v821_v9, %v3031_v2 }
 0x2ed   :  { %v393_v31 = vrot.slane %v385_v25, %v3035_v12  ;;  %v400_v32 = vrot.slane %v386_v26, %v3035_v12  ;;  %v471_v33 = vcombine.low %v377_v23, %v384_v24  ;;  %v2428_v34 = vcombine.high %v377_v23, %v384_v24 }
 0x2ee   :  { %v443_v35 = vrot.slane %v435_v28, %v3035_v12  ;;  %v450_v36 = vrot.slane %v436_v29, %v3035_v12  ;;  %v451_v37 = vcombine.low %v419_v19, %v434_v27  ;;  %v452_v38 = vcombine.high %v419_v19, %v434_v27 }
 0x2ef   :  { %v478_v39 = vrot.slane %v471_v33, %v3031_v2  ;;  %v487_v40 = vcombine.low %v393_v31, %v400_v32  ;;  %v2429_v41 = vcombine.high %v393_v31, %v400_v32  ;;  %v836_v42 = vrot.slane %v2443_v10, %v3031_v2 }
 0x2f0   :  { %v459_v43 = vrot.slane %v451_v37, %v3035_v12  ;;  %v466_v45 = vrot.slane %v452_v38, %v3035_v12  ;;  %v521_v46 = vcombine.low %v443_v35, %v450_v36  ;;  %v2430_v47 = vcombine.high %v443_v35, %v450_v36 }
 0x2f1   :  { %v486_v48 = vrot.slane %v2428_v34, %v3031_v2  ;;  %v494_v49 = vrot.slane %v487_v40, %v3031_v2  ;;  %v502_v50 = vrot.slane %v2429_v41, %v3031_v2  ;;  %v837_v52 = vcombine.low %v812_v1, %v820_v5 }
 0x2f2   :  { %v528_v53 = vrot.slane %v521_v46, %v3031_v2  ;;  %v536_v54 = vrot.slane %v2430_v47, %v3031_v2  ;;  %v537_v55 = vcombine.low %v459_v43, %v466_v45  ;;  %v2431_v56 = vcombine.high %v459_v43, %v466_v45 }
 0x2f3   :  { %v511_v57 = vcombine.low %v494_v49, %v502_v50  ;;  %v802_v58 = vrot.slane %v795_v22, %v3035_v12  ;;  %v845_v59 = vcombine.low %v828_v30, %v836_v42  ;;  %v503_v0 = vcombine.low %v478_v39, %v486_v48 }
 0x2f4   :  { %v544_v44 = vrot.slane %v537_v55, %v3031_v2  ;;  %v552_v60 = vrot.slane %v2431_v56, %v3031_v2  ;;  %v553_v63 = vcombine.low %v528_v53, %v536_v54  ;;  %v794_v3 = vrot.slane %v787_v21, %v3035_v12 }
 0x2f5   :  { %v844_v1 = vrot.slane %v837_v52, %v3035_v12  ;;  %v852_v4 = vrot.slane %v845_v59, %v3035_v12  ;;  %v518_v6 = vrot.slane %v511_v57, %v3035_v12  ;;  %v510_v11 = vrot.slane %v503_v0, %v3035_v12 }
 0x2f6   :  { %v561_v5 = vcombine.low %v544_v44, %v552_v60  ;;  %v803_v7 = vcombine.low %v794_v3, %v802_v58  ;;  %v560_v9 = vrot.slane %v553_v63, %v3035_v12  ;;  %v804_v31 = vcombine.high %v794_v3, %v802_v58 }
 0x2f7   :  { %v853_v8 = vcombine.low %v844_v1, %v852_v4  ;;  %v519_v19 = vcombine.low %v510_v11, %v518_v6  ;;  %v854_v25 = vcombine.high %v844_v1, %v852_v4  ;;  %v520_v47 = vcombine.high %v510_v11, %v518_v6 }
 0x2f8   :  { %v568_v10 = vrot.slane %v561_v5, %v3035_v12  ;;  %v858_v20 = vshrl.u32 %v803_v7, 16  ;;  %v864_v43 = vshrl.u32 %v804_v31, 16 }
 0x2f9   :  { %v857_v13 = vpack.i.b16 %v853_v8, %v803_v7  ;;  %v859_v14 = vshrl.u32 %v853_v8, 16  ;;  %v574_v34 = vshrl.u32 %v519_v19, 16  ;;  %v863_v35 = vpack.i.b16 %v854_v25, %v804_v31 }
 0x2fa   :  { %v569_v15 = vcombine.low %v560_v9, %v568_v10  ;;  %v865_v39 = vshrl.u32 %v854_v25, 16  ;;  %v570_v42 = vcombine.high %v560_v9, %v568_v10  ;;  %v580_v58 = vshrl.u32 %v520_v47, 16 }
 0x2fb   :  { %v2444_v17 = vcombine.low %v857_v13, %v857_v13  ;;  %v2445_v18 = vcombine.high %v857_v13, %v857_v13  ;;  %v860_v24 = vpack.i.b16 %v859_v14, %v858_v20  ;;  %v2448_v37 = vcombine.low %v863_v35, %v863_v35 }
 0x2fc   :  { %v573_v23 = vpack.i.b16 %v569_v15, %v519_v19  ;;  %v575_v30 = vshrl.u32 %v569_v15, 16  ;;  %v2449_v38 = vcombine.high %v863_v35, %v863_v35  ;;  %v866_v48 = vpack.i.b16 %v865_v39, %v864_v43 }
 0x2fd   :  { %v1172_v21 = vsel %vm1167_vm2, %v2444_v17, 0  ;;  %v1218_v22 = vsel %vm1167_vm2, %v2445_v18, 0  ;;  %v2446_v28 = vcombine.low %v860_v24, %v860_v24  ;;  %v2447_v29 = vcombine.high %v860_v24, %v860_v24 }
 0x2fe   :  { %2561 = vmatpush3.bf16.xpose.msra.mxu1 %v1172_v21  ;;  %2567 = vmatpush3.bf16.xpose.msra.mxu0 %v1218_v22  ;;  %v2432_v26 = vcombine.low %v573_v23, %v573_v23  ;;  %v2433_v27 = vcombine.high %v573_v23, %v573_v23  ;;  %v576_v36 = vpack.i.b16 %v575_v30, %v574_v34  ;;  %v1356_v45 = vsel %vm1167_vm2, %v2448_v37, 0 }
 0x2ff   :  { %2572 = vmatprep.subr.bf16.mxu1 %v2855_v16  ;;  %2578 = vmatprep.subr.bf16.mxu0 %v2855_v16  ;;  %v1264_v32 = vsel %vm1167_vm2, %v2446_v28, 0  ;;  %v1310_v33 = vsel %vm1167_vm2, %v2447_v29, 0  ;;  %v1402_v46 = vsel %vm1167_vm2, %v2449_v38, 0  ;;  %v579_v49 = vpack.i.b16 %v570_v42, %v520_v47 }
 0x300   :  { %v2434_v40 = vcombine.low %v576_v36, %v576_v36  ;;  %v2435_v41 = vcombine.high %v576_v36, %v576_v36  ;;  %v2450_v50 = vcombine.low %v866_v48, %v866_v48  ;;  %v2451_v52 = vcombine.high %v866_v48, %v866_v48 }
 0x301   :  { %v2436_v53 = vcombine.low %v579_v49, %v579_v49  ;;  %v2437_v54 = vcombine.high %v579_v49, %v579_v49  ;;  %v581_v55 = vshrl.u32 %v570_v42, 16  ;;  %v886_v42 = vpop.permute.xlu0 %885 }
 0x302   :  { %v1448_v56 = vsel %vm1167_vm2, %v2450_v50, 0  ;;  %v1494_v57 = vsel %vm1167_vm2, %v2451_v52, 0  ;;  %v893_v43 = vpack.i.b16 %v886_v42, %v3021_v51  ;;  %v895_v50 = vshrl.u32 %v3021_v51, 16 }
 0x303   :  { %v582_v59 = vpack.i.b16 %v581_v55, %v580_v58 }
 0x304   :  { %v907_v55 = vcombine.high %v893_v43, %v3029_v62 }
 0x305   :  { %2563 = vmatmul.mubr.msk.bf16.vlgmr.msra.gmra.mrb[4].mxu1 %vm1167_vm2, %v2432_v26  ;;  %2569 = vmatmul.mubr.msk.bf16.vlgmr.msra.gmra.mrb[8].mxu0 %vm1167_vm2, %v2433_v27  ;;  %v2438_v44 = vcombine.low %v582_v59, %v582_v59  ;;  %v2439_v60 = vcombine.high %v582_v59, %v582_v59 }
 0x306   :  { %2573 = vmatpush3.bf16.xpose.msra.mxu1 %v1264_v32  ;;  %2579 = vmatpush3.bf16.xpose.msra.mxu0 %v1310_v33 }
 0x307   :  { %2574 = vmatprep.mubr.msk.bf16.mxu1 %vm2856_vm1, %v2855_v16  ;;  %2580 = vmatprep.mubr.msk.bf16.mxu0 %vm2856_vm1, %v2855_v16 }
 0x308   :  { %2584 = vmatprep.subr.bf16.mxu1 %v2855_v16  ;;  %2590 = vmatprep.subr.bf16.mxu0 %v2855_v16 }
 0x30d   :  { %2575 = vmatmul.mubr.msk.bf16.vlgmr.msra.gmra.mrb[8].mxu1 %vm1167_vm2, %v2434_v40  ;;  %2581 = vmatmul.mubr.msk.bf16.vlgmr.msra.gmra.mrb[12].mxu0 %vm1167_vm2, %v2435_v41 }
 0x30e   :  { %2585 = vmatpush3.bf16.xpose.msra.mxu1 %v1356_v45  ;;  %2591 = vmatpush3.bf16.xpose.msra.mxu0 %v1402_v46  ;;  %v896_v45 = vshrl.u32 %v886_v42, 16 }
 0x30f   :  { %2586 = vmatprep.mubr.msk.bf16.mxu1 %vm2856_vm1, %v2855_v16  ;;  %2592 = vmatprep.mubr.msk.bf16.mxu0 %vm2856_vm1, %v2855_v16 }
 0x310   :  { %2596 = vmatprep.subr.bf16.mxu1 %v2855_v16  ;;  %2602 = vmatprep.subr.bf16.mxu0 %v2855_v16 }
 0x315   :  { %2587 = vmatmul.mubr.msk.bf16.vlgmr.msra.gmra.mrb[12].mxu1 %vm1167_vm2, %v2436_v53  ;;  %2593 = vmatmul.mubr.msk.bf16.vlgmr.msra.gmra.mrb[16].mxu0 %vm1167_vm2, %v2437_v54  ;;  %v897_v54 = vpack.i.b16 %v896_v45, %v895_v50 }
 0x316   :  { %2597 = vmatpush3.bf16.xpose.msra.mxu1 %v1448_v56  ;;  %2603 = vmatpush3.bf16.xpose.msra.mxu0 %v1494_v57 }
 0x317   :  { %2598 = vmatprep.mubr.msk.bf16.mxu1 %vm2856_vm1, %v2855_v16  ;;  %2604 = vmatprep.mubr.msk.bf16.mxu0 %vm2856_vm1, %v2855_v16 }
 0x318   :  { %2608 = vmatprep.subr.bf16.mxu1 %v2855_v16  ;;  %2614 = vmatprep.subr.bf16.mxu0 %v2855_v16 }
 0x31d   :  { %2599 = vmatmul.mubr.msk.bf16.vlgmr.msra.gmra.mrb[16].mxu1 %vm1167_vm2, %v2438_v44  ;;  %2605 = vmatmul.mubr.msk.bf16.vlgmr.msra.gmra.mrb[20].mxu0 %vm1167_vm2, %v2439_v60  ;;  %v914_v60 = vrot.slane %v893_v43, %v3031_v2 }
 0x31e   :  { %2610 = vmatprep.mubr.msk.bf16.mxu1 %vm2856_vm1, %v2855_v16  ;;  %2616 = vmatprep.mubr.msk.bf16.mxu0 %vm2856_vm1, %v2855_v16 }
 0x3d8   :  { %v1208_v63 = vpop.f32.mrb[4].mxu1  ;;  %v1254_v0 = vpop.f32.mrb[8].mxu0 }
 0x3d9   :  { %v2564_v3 = vpop.f32.mrb[5].mxu1  ;;  %v2570_v1 = vpop.f32.mrb[9].mxu0  ;;  %v1536_v4 = vsel %vm1167_vm2, %v1208_v63, -inf  ;;  %v1539_v5 = vsel %vm1167_vm2, %v1254_v0, -inf }
 0x3da   :  { %v1211_v6 = vpop.f32.mrb[6].mxu1  ;;  %1537 = vmax.xlane.f32.xlu0 %v1536_v4  ;;  %1540 = vmax.xlane.f32.xlu1 %v1539_v5  ;;  %v1257_v7 = vpop.f32.mrb[10].mxu0  ;;  %v973_v1 = vcombine.high %v897_v54, %v3029_v62 }
 0x3db   :  { %v2565_v8 = vpop.f32.mrb[7].mxu1  ;;  %v2571_v9 = vpop.f32.mrb[11].mxu0 }
 0x3dc   :  { %v980_v8 = vrot.slane %v897_v54, %v3031_v2 }
 0x3e0   :  { %v3149_v10 = vpop.f32.mrb[8].mxu1  ;;  %v3151_v11 = vpop.f32.mrb[12].mxu0 }
 0x3e1   :  { %v2576_v13 = vpop.f32.mrb[9].mxu1  ;;  %v2582_v14 = vpop.f32.mrb[13].mxu0  ;;  %v1542_v36 = vsel %vm1167_vm2, %v3149_v10, -inf  ;;  %v1545_v37 = vsel %vm1167_vm2, %v3151_v11, -inf }
 0x3e2   :  { %v1303_v15 = vpop.f32.mrb[10].mxu1  ;;  %v1349_v17 = vpop.f32.mrb[14].mxu0 }
 0x3e3   :  { %v2577_v18 = vpop.f32.mrb[11].mxu1  ;;  %v2583_v19 = vpop.f32.mrb[15].mxu0 }
 0x3e4   :  { %v987_v18 = vrot.slane %v973_v1, %v3031_v2 }
 0x3e8   :  { %v3153_v20 = vpop.f32.mrb[12].mxu1  ;;  %v3155_v21 = vpop.f32.mrb[16].mxu0 }
 0x3e9   :  { %v2588_v22 = vpop.f32.mrb[13].mxu1  ;;  %v2594_v23 = vpop.f32.mrb[17].mxu0  ;;  %v1548_v39 = vsel %vm1167_vm2, %v3153_v20, -inf  ;;  %v1551_v40 = vsel %vm1167_vm2, %v3155_v21, -inf }
 0x3ea   :  { %v1395_v24 = vpop.f32.mrb[14].mxu1  ;;  %v1441_v25 = vpop.f32.mrb[18].mxu0 }
 0x3eb   :  { %v2589_v26 = vpop.f32.mrb[15].mxu1  ;;  %887 = vrot.lane.b32.xlu1 %v3021_v51, %s2857_s2  ;;  %v2595_v27 = vpop.f32.mrb[19].mxu0 }
 0x3f0   :  { %v3159_v28 = vpop.f32.mrb[16].mxu1  ;;  %889 = vrot.lane.b32.xlu0 %v3021_v51, %s2859_s19  ;;  %v3163_v29 = vpop.f32.mrb[20].mxu0  ;;  %v921_v51 = vrot.slane %v907_v55, %v3031_v2 }
 0x3f1   :  { %v2600_v30 = vpop.f32.mrb[17].mxu1  ;;  %v2606_v31 = vpop.f32.mrb[21].mxu0  ;;  %v1554_v38 = vsel %vm1167_vm2, %v3159_v28, -inf  ;;  %v1557_v41 = vsel %vm1167_vm2, %v3163_v29, -inf }
 0x3f2   :  { %v1487_v32 = vpop.f32.mrb[18].mxu1  ;;  %v1533_v33 = vpop.f32.mrb[22].mxu0 }
 0x3f3   :  { %v2601_v34 = vpop.f32.mrb[19].mxu1  ;;  %v2607_v35 = vpop.f32.mrb[23].mxu0 }
 0x40f   :  { %1543 = vmax.xlane.f32.xlu1 %v1542_v36  ;;  %1546 = vmax.xlane.f32.xlu0 %v1545_v37 }
 0x413   :  { %1555 = vmax.xlane.f32.xlu1 %v1554_v38  ;;  %1549 = vmax.xlane.f32.xlu0 %v1548_v39 }
 0x417   :  { %1552 = vmax.xlane.f32.xlu0 %v1551_v40 }
 0x41b   :  { %1558 = vmax.xlane.f32.xlu0 %v1557_v41 }
 0x467   :  { %v1538_v46 = vpop.xlane.xlu0 %1537  ;;  %v1541_v47 = vpop.xlane.xlu1 %1540 }
 0x468   :  { %v1560_v48 = vsub.f32 %v1208_v63, %v1538_v46  ;;  %v1561_v49 = vsub.f32 %v1254_v0, %v1541_v47 }
 0x46a   :  { %v1568_v52 = vmul.f32 1.442695, %v1560_v48  ;;  %v1570_v53 = vmul.f32 1.442695, %v1561_v49 }
 0x46b   :  { %v890_v56 = vpop.permute.xlu0 %889  ;;  %v888_v57 = vpop.permute.xlu1 %887 }
 0x46c   :  { %2695 = vpow2.f32 %v1568_v52  ;;  %v904_v58 = vshrl.u32 %v890_v56, 16  ;;  %v901_v59 = vpack.i.b16 %v890_v56, %v888_v57  ;;  %v903_v44 = vshrl.u32 %v888_v57, 16 }
 0x46d   :  { %2697 = vpow2.f32 %v1570_v53 }
 0x46e   :  { %v905_v3 = vpack.i.b16 %v904_v58, %v903_v44  ;;  %v922_v63 = vcombine.high %v901_v59, %v3029_v62  ;;  %v929_v0 = vrot.slane %v901_v59, %v3031_v2 }
 0x470   :  { %v936_v4 = vrot.slane %v922_v63, %v3031_v2  ;;  %v937_v5 = vcombine.low %v914_v60, %v929_v0  ;;  %v938_v6 = vcombine.high %v914_v60, %v929_v0  ;;  %v988_v7 = vcombine.high %v905_v3, %v3029_v62 }
 0x471   :  { %v995_v9 = vrot.slane %v905_v3, %v3031_v2 }
 0x472   :  { %v945_v13 = vrot.slane %v937_v5, %v3035_v12  ;;  %v952_v14 = vrot.slane %v938_v6, %v3035_v12  ;;  %v953_v15 = vcombine.low %v921_v51, %v936_v4  ;;  %v954_v17 = vcombine.high %v921_v51, %v936_v4 }
 0x473   :  { %v1002_v19 = vrot.slane %v988_v7, %v3031_v2  ;;  %v1003_v22 = vcombine.low %v980_v8, %v995_v9  ;;  %v1004_v23 = vcombine.high %v980_v8, %v995_v9 }
 0x474   :  { %v961_v24 = vrot.slane %v953_v15, %v3035_v12  ;;  %v968_v62 = vrot.slane %v954_v17, %v3035_v12  ;;  %v1039_v25 = vcombine.low %v945_v13, %v952_v14  ;;  %v2452_v26 = vcombine.high %v945_v13, %v952_v14 }
 0x475   :  { %v1011_v27 = vrot.slane %v1003_v22, %v3035_v12  ;;  %v1018_v30 = vrot.slane %v1004_v23, %v3035_v12  ;;  %v1019_v31 = vcombine.low %v987_v18, %v1002_v19  ;;  %v1020_v32 = vcombine.high %v987_v18, %v1002_v19 }
 0x476   :  { %v2696_v33 = vpop.eup %2695  ;;  %v1046_v34 = vrot.slane %v1039_v25, %v3031_v2  ;;  %v1054_v35 = vrot.slane %v2452_v26, %v3031_v2  ;;  %v1055_v36 = vcombine.low %v961_v24, %v968_v62  ;;  %v2453_v37 = vcombine.high %v961_v24, %v968_v62 }
 0x477   :  { %v2698_v38 = vpop.eup %2697  ;;  %v1027_v39 = vrot.slane %v1019_v31, %v3035_v12  ;;  %v1034_v40 = vrot.slane %v1020_v32, %v3035_v12  ;;  %v1089_v41 = vcombine.low %v1011_v27, %v1018_v30  ;;  %v2454_v42 = vcombine.high %v1011_v27, %v1018_v30 }
 0x478   :  { %v1062_v43 = vrot.slane %v1055_v36, %v3031_v2  ;;  %v1070_v45 = vrot.slane %v2453_v37, %v3031_v2  ;;  %v1584_v46 = vsel %vm1167_vm2, %v2696_v33, 0.0  ;;  %v1587_v47 = vsel %vm1167_vm2, %v2698_v38, 0.0 }
 0x479   :  { %v1096_v48 = vrot.slane %v1089_v41, %v3031_v2  ;;  %v1104_v49 = vrot.slane %v2454_v42, %v3031_v2  ;;  %v1105_v50 = vcombine.low %v1027_v39, %v1034_v40  ;;  %v2455_v52 = vcombine.high %v1027_v39, %v1034_v40  ;;  %1585 = vadd.xlane.f32.xlu1 %v1584_v46 }
 0x47a   :  { %1588 = vadd.xlane.f32.xlu0 %v1587_v47  ;;  %v1071_v53 = vcombine.low %v1046_v34, %v1054_v35  ;;  %v1079_v54 = vcombine.low %v1062_v43, %v1070_v45  ;;  %v1608_v15 = vpack.c.bf16 %v2696_v33, %v2696_v33  ;;  %v1609_v17 = vpack.c.bf16 %v2698_v38, %v2698_v38 }
 0x47b   :  { %v1112_v55 = vrot.slane %v1105_v50, %v3031_v2  ;;  %v1120_v56 = vrot.slane %v2455_v52, %v3031_v2  ;;  %v1121_v57 = vcombine.low %v1096_v48, %v1104_v49 }
 0x47c   :  { %v1086_v58 = vrot.slane %v1079_v54, %v3035_v12  ;;  %v1078_v59 = vrot.slane %v1071_v53, %v3035_v12 }
 0x47d   :  { %v1129_v44 = vcombine.low %v1112_v55, %v1120_v56  ;;  %v1128_v3 = vrot.slane %v1121_v57, %v3035_v12 }
 0x47e   :  { %v1087_v60 = vcombine.low %v1078_v59, %v1086_v58  ;;  %v1088_v37 = vcombine.high %v1078_v59, %v1086_v58 }
 0x47f   :  { %v1136_v63 = vrot.slane %v1129_v44, %v3035_v12 }
 0x480   :  { %v1142_v1 = vshrl.u32 %v1087_v60, 16  ;;  %v1148_v48 = vshrl.u32 %v1088_v37, 16 }
 0x481   :  { %v1137_v0 = vcombine.low %v1128_v3, %v1136_v63  ;;  %v1138_v33 = vcombine.high %v1128_v3, %v1136_v63 }
 0x483   :  { %v1141_v51 = vpack.i.b16 %v1137_v0, %v1087_v60  ;;  %v1143_v4 = vshrl.u32 %v1137_v0, 16 }
 0x485   :  { %v2456_v5 = vcombine.low %v1141_v51, %v1141_v51  ;;  %v2457_v6 = vcombine.high %v1141_v51, %v1141_v51  ;;  %v1144_v7 = vpack.i.b16 %v1143_v4, %v1142_v1 }
 0x487   :  { %v1621_v8 = vsel %vm1619_vm3, %v2456_v5, 0  ;;  %v1667_v9 = vsel %vm1619_vm3, %v2457_v6, 0  ;;  %v2458_v13 = vcombine.low %v1144_v7, %v1144_v7  ;;  %v2459_v14 = vcombine.high %v1144_v7, %v1144_v7  ;;  %v2689_v6 = vld [vmem:[#allocation8] sm:$0xff]  }
 0x488   :  { %2609 = vmatpush3.bf16.msra.mxu1 %v1621_v8  ;;  %2615 = vmatpush3.bf16.msra.mxu0 %v1667_v9 }
 0x489   :  { %2620 = vmatprep.subr.bf16.mxu1 %v2855_v16  ;;  %2626 = vmatprep.subr.bf16.mxu0 %v2855_v16  ;;  %v1713_v18 = vsel %vm1619_vm3, %v2458_v13, 0  ;;  %v1759_v19 = vsel %vm1619_vm3, %v2459_v14, 0 }
 0x48b   :  { %2611 = vmatmul.mubr.msk.bf16.vlgmr.msra.gmra.mrb[20].mxu1 %vm1167_vm2, %v1608_v15  ;;  %2617 = vmatmul.mubr.msk.bf16.vlgmr.msra.gmra.mrb[24].mxu0 %vm1167_vm2, %v1609_v17 }
 0x48c   :  { %2621 = vmatpush3.bf16.msra.mxu1 %v1713_v18  ;;  %2627 = vmatpush3.bf16.msra.mxu0 %v1759_v19 }
 0x48d   :  { %2622 = vmatprep.mubr.msk.bf16.mxu1 %vm2856_vm1, %v2855_v16  ;;  %2628 = vmatprep.mubr.msk.bf16.mxu0 %vm2856_vm1, %v2855_v16 }
 0x48e   :  { %2632 = vmatprep.subr.bf16.mxu1 %v2855_v16  ;;  %2638 = vmatprep.subr.bf16.mxu0 %v2855_v16 }
 0x49c   :  { %v1544_v22 = vpop.xlane.xlu1 %1543  ;;  %v1547_v23 = vpop.xlane.xlu0 %1546 }
 0x49d   :  { %v1562_v24 = vsub.f32 %v3149_v10, %v1544_v22  ;;  %v1563_v62 = vsub.f32 %v3151_v11, %v1547_v23  ;;  %v1147_v10 = vpack.i.b16 %v1138_v33, %v1088_v37 }
 0x49f   :  { %v1572_v25 = vmul.f32 1.442695, %v1562_v24  ;;  %v1574_v26 = vmul.f32 1.442695, %v1563_v62  ;;  %v2460_v41 = vcombine.low %v1147_v10, %v1147_v10  ;;  %v2461_v43 = vcombine.high %v1147_v10, %v1147_v10 }
 0x4a0   :  { %v1556_v27 = vpop.xlane.xlu1 %1555  ;;  %v1550_v30 = vpop.xlane.xlu0 %1549 }
 0x4a1   :  { %2699 = vpow2.f32 %v1572_v25  ;;  %v1566_v31 = vsub.f32 %v3159_v28, %v1556_v27  ;;  %v1564_v32 = vsub.f32 %v3153_v20, %v1550_v30  ;;  %v1149_v28 = vshrl.u32 %v1138_v33, 16 }
 0x4a2   :  { %2701 = vpow2.f32 %v1574_v26  ;;  %v1851_v52 = vsel %vm1619_vm3, %v2461_v43, 0 }
 0x4a3   :  { %v1576_v34 = vmul.f32 1.442695, %v1564_v32  ;;  %v1580_v35 = vmul.f32 1.442695, %v1566_v31  ;;  %v1150_v50 = vpack.i.b16 %v1149_v28, %v1148_v48 }
 0x4a4   :  { %v1553_v36 = vpop.xlane.xlu0 %1552 }
 0x4a5   :  { %v1565_v38 = vsub.f32 %v3155_v21, %v1553_v36  ;;  %2703 = vpow2.f32 %v1576_v34  ;;  %v2462_v56 = vcombine.low %v1150_v50, %v1150_v50  ;;  %v2463_v58 = vcombine.high %v1150_v50, %v1150_v50 }
 0x4a6   :  { %2705 = vpow2.f32 %v1580_v35 }
 0x4a7   :  { %v1578_v11 = vmul.f32 1.442695, %v1565_v38  ;;  %v1897_v63 = vsel %vm1619_vm3, %v2462_v56, 0  ;;  %v1943_v51 = vsel %vm1619_vm3, %v2463_v58, 0 }
 0x4a8   :  { %v1559_v39 = vpop.xlane.xlu0 %1558 }
 0x4a9   :  { %2707 = vpow2.f32 %v1578_v11  ;;  %v1567_v40 = vsub.f32 %v3163_v29, %v1559_v39  ;;  %v1805_v29 = vsel %vm1619_vm3, %v2460_v41, 0 }
 0x4ab   :  { %v2700_v42 = vpop.eup %2699  ;;  %v1582_v20 = vmul.f32 1.442695, %v1567_v40 }
 0x4ac   :  { %v2702_v45 = vpop.eup %2701  ;;  %v1590_v46 = vsel %vm1167_vm2, %v2700_v42, 0.0  ;;  %v1610_v47 = vpack.c.bf16 %v2700_v42, %v2700_v42 }
 0x4ad   :  { %2709 = vpow2.f32 %v1582_v20  ;;  %1591 = vadd.xlane.f32.xlu1 %v1590_v46  ;;  %v1593_v21 = vsel %vm1167_vm2, %v2702_v45, 0.0  ;;  %v1611_v49 = vpack.c.bf16 %v2702_v45, %v2702_v45 }
 0x4ae   :  { %1594 = vadd.xlane.f32.xlu0 %v1593_v21  ;;  %2623 = vmatmul.mubr.msk.bf16.vlgmr.msra.gmra.mrb[24].mxu1 %vm1167_vm2, %v1610_v47 }
 0x4af   :  { %2629 = vmatmul.mubr.msk.bf16.vlgmr.msra.gmra.mrb[28].mxu0 %vm1167_vm2, %v1611_v49  ;;  %2633 = vmatpush3.bf16.msra.mxu1 %v1805_v29  ;;  %v2704_v53 = vpop.eup %2703 }
 0x4b0   :  { %2639 = vmatpush3.bf16.msra.mxu0 %v1851_v52  ;;  %2634 = vmatprep.mubr.msk.bf16.mxu1 %vm2856_vm1, %v2855_v16  ;;  %v1596_v54 = vsel %vm1167_vm2, %v2704_v53, 0.0  ;;  %v2706_v55 = vpop.eup %2705  ;;  %v1612_v44 = vpack.c.bf16 %v2704_v53, %v2704_v53 }
 0x4b1   :  { %2640 = vmatprep.mubr.msk.bf16.mxu0 %vm2856_vm1, %v2855_v16  ;;  %2644 = vmatprep.subr.bf16.mxu1 %v2855_v16  ;;  %v1602_v3 = vsel %vm1167_vm2, %v2706_v55, 0.0  ;;  %v1614_v4 = vpack.c.bf16 %v2706_v55, %v2706_v55 }
 0x4b2   :  { %1597 = vadd.xlane.f32.xlu1 %v1596_v54  ;;  %2650 = vmatprep.subr.bf16.mxu0 %v2855_v16 }
 0x4b3   :  { %v2708_v57 = vpop.eup %2707 }
 0x4b4   :  { %v1599_v59 = vsel %vm1167_vm2, %v2708_v57, 0.0  ;;  %v1613_v60 = vpack.c.bf16 %v2708_v57, %v2708_v57 }
 0x4b5   :  { %1600 = vadd.xlane.f32.xlu0 %v1599_v59 }
 0x4b6   :  { %1603 = vadd.xlane.f32.xlu1 %v1602_v3  ;;  %2635 = vmatmul.mubr.msk.bf16.vlgmr.msra.gmra.mrb[28].mxu1 %vm1167_vm2, %v1612_v44 }
 0x4b7   :  { %v2710_v0 = vpop.eup %2709  ;;  %2641 = vmatmul.mubr.msk.bf16.vlgmr.msra.gmra.mrb[32].mxu0 %vm1167_vm2, %v1613_v60  ;;  %2645 = vmatpush3.bf16.msra.mxu1 %v1897_v63 }
 0x4b8   :  { %2651 = vmatpush3.bf16.msra.mxu0 %v1943_v51  ;;  %v1605_v1 = vsel %vm1167_vm2, %v2710_v0, 0.0  ;;  %2646 = vmatprep.mubr.msk.bf16.mxu1 %vm2856_vm1, %v2855_v16  ;;  %v1615_v5 = vpack.c.bf16 %v2710_v0, %v2710_v0 }
 0x4b9   :  { %1606 = vadd.xlane.f32.xlu0 %v1605_v1  ;;  %2652 = vmatprep.mubr.msk.bf16.mxu0 %vm2856_vm1, %v2855_v16 }
 0x4ba   :  { %2656 = vmatprep.subr.bf16.mxu1 %v2855_v16 }
 0x4be   :  { %2647 = vmatmul.mubr.msk.bf16.vlgmr.msra.gmra.mrb[32].mxu1 %vm1167_vm2, %v1614_v4 }
 0x4bf   :  { %2653 = vmatmul.mubr.msk.bf16.vlgmr.msra.gmra.mrb[36].mxu0 %vm1167_vm2, %v1615_v5  ;;  %2660 = vmatprep.mubr.msk.bf16.mxu1 %vm2856_vm1, %v2855_v16 }
 0x4c0   :  { %2657 = vmatpush3.bf16.msra.mxu1 %v2689_v6 }
 0x4c1   :  { %2658 = vmatprep.subr.bf16.mxu1 %v2855_v16 }
 0x506   :  { %v1586_v19 = vpop.xlane.xlu1 %1585 }
 0x507   :  { %v1589_v22 = vpop.xlane.xlu0 %1588  ;;  %2711 = vrcp.f32 %v1586_v19 }
 0x508   :  { %2713 = vrcp.f32 %v1589_v22 }
 0x511   :  { %v2712_v25 = vpop.eup %2711 }
 0x512   :  { %v2714_v26 = vpop.eup %2713 }
 0x53a   :  { %v1592_v23 = vpop.xlane.xlu1 %1591 }
 0x53b   :  { %v1595_v24 = vpop.xlane.xlu0 %1594  ;;  %2715 = vrcp.f32 %v1592_v23 }
 0x53c   :  { %2717 = vrcp.f32 %v1595_v24 }
 0x53f   :  { %v1598_v62 = vpop.xlane.xlu1 %1597 }
 0x540   :  { %2719 = vrcp.f32 %v1598_v62 }
 0x542   :  { %v1601_v27 = vpop.xlane.xlu0 %1600 }
 0x543   :  { %v1604_v32 = vpop.xlane.xlu1 %1603  ;;  %2721 = vrcp.f32 %v1601_v27 }
 0x544   :  { %2723 = vrcp.f32 %v1604_v32 }
 0x545   :  { %v2716_v31 = vpop.eup %2715 }
 0x546   :  { %v2718_v34 = vpop.eup %2717  ;;  %v1607_v20 = vpop.xlane.xlu0 %1606 }
 0x547   :  { %2725 = vrcp.f32 %v1607_v20 }
 0x54a   :  { %v2720_v44 = vpop.eup %2719 }
 0x54d   :  { %v2722_v3 = vpop.eup %2721 }
 0x54e   :  { %v2724_v51 = vpop.eup %2723 }
 0x551   :  { %v2726_v4 = vpop.eup %2725 }
 0x55e   :  { %v1657_v7 = vpop.f32.mrb[20].mxu1  ;;  %v1703_v8 = vpop.f32.mrb[24].mxu0 }
 0x55f   :  { %v2612_v9 = vpop.f32.mrb[21].mxu1  ;;  %v2618_v13 = vpop.f32.mrb[25].mxu0  ;;  %v2001_v16 = vmul.f32 %v2712_v25, %v1657_v7  ;;  %v2002_v30 = vmul.f32 %v2714_v26, %v1703_v8 }
 0x560   :  { %v1660_v14 = vpop.f32.mrb[22].mxu1  ;;  %v1706_v15 = vpop.f32.mrb[26].mxu0 }
 0x561   :  { %v2613_v17 = vpop.f32.mrb[23].mxu1  ;;  %v2619_v18 = vpop.f32.mrb[27].mxu0  ;;  %v2009_v35 = vpack.c.bf16 %v2001_v16, %v2001_v16  ;;  %v2010_v10 = vpack.c.bf16 %v2002_v30, %v2002_v30 }
 0x563   :  { %v2020_v46 = vshrl.u32 %v2009_v35, 16  ;;  %v2032_v21 = vshrl.u32 %v2010_v10, 16 }
 0x581   :  { %v1749_v33 = vpop.f32.mrb[24].mxu1 }
 0x582   :  { %v2003_v36 = vmul.f32 %v2716_v31, %v1749_v33  ;;  %v1795_v37 = vpop.f32.mrb[28].mxu0  ;;  %v2624_v38 = vpop.f32.mrb[25].mxu1 }
 0x583   :  { %v2004_v11 = vmul.f32 %v2718_v34, %v1795_v37  ;;  %v2630_v39 = vpop.f32.mrb[29].mxu0  ;;  %v1752_v40 = vpop.f32.mrb[26].mxu1 }
 0x584   :  { %v2011_v41 = vpack.c.bf16 %v2003_v36, %v2003_v36  ;;  %v1798_v28 = vpop.f32.mrb[30].mxu0  ;;  %v2625_v42 = vpop.f32.mrb[27].mxu1 }
 0x585   :  { %v2012_v43 = vpack.c.bf16 %v2004_v11, %v2004_v11  ;;  %v2631_v45 = vpop.f32.mrb[31].mxu0 }
 0x586   :  { %v2019_v47 = vpack.i.b16 %v2011_v41, %v2009_v35  ;;  %v2021_v48 = vshrl.u32 %v2011_v41, 16 }
 0x587   :  { %v2031_v49 = vpack.i.b16 %v2012_v43, %v2010_v10  ;;  %v2033_v29 = vshrl.u32 %v2012_v43, 16 }
 0x588   :  { %v2022_v50 = vpack.i.b16 %v2021_v48, %v2020_v46  ;;  %v2048_v30 = vrot.slane %v2019_v47, %v3031_v2 }
 0x589   :  { %v2034_v52 = vpack.i.b16 %v2033_v29, %v2032_v21  ;;  %v1841_v53 = vpop.f32.mrb[28].mxu1  ;;  %v2116_v33 = vrot.slane %v2031_v49, %v3031_v2 }
 0x58a   :  { %v1887_v54 = vpop.f32.mrb[32].mxu0  ;;  %v2636_v55 = vpop.f32.mrb[29].mxu1  ;;  %v2005_v63 = vmul.f32 %v2720_v44, %v1841_v53  ;;  %v2082_v36 = vrot.slane %v2022_v50, %v3031_v2 }
 0x58b   :  { %v2642_v56 = vpop.f32.mrb[33].mxu0  ;;  %v1844_v57 = vpop.f32.mrb[30].mxu1  ;;  %v2006_v0 = vmul.f32 %v2722_v3, %v1887_v54  ;;  %v2150_v11 = vrot.slane %v2034_v52, %v3031_v2 }
 0x58c   :  { %v1890_v58 = vpop.f32.mrb[34].mxu0  ;;  %v2637_v59 = vpop.f32.mrb[31].mxu1  ;;  %v2013_v5 = vpack.c.bf16 %v2005_v63, %v2005_v63 }
 0x58d   :  { %v2643_v60 = vpop.f32.mrb[35].mxu0  ;;  %v2014_v9 = vpack.c.bf16 %v2006_v0, %v2006_v0 }
 0x58e   :  { %v2026_v24 = vshrl.u32 %v2013_v5, 16 }
 0x58f   :  { %v2038_v26 = vshrl.u32 %v2014_v9, 16 }
 0x591   :  { %v1933_v1 = vpop.f32.mrb[32].mxu1 }
 0x592   :  { %v2007_v6 = vmul.f32 %v2724_v51, %v1933_v1  ;;  %v1979_v7 = vpop.f32.mrb[36].mxu0  ;;  %v2648_v8 = vpop.f32.mrb[33].mxu1 }
 0x593   :  { %v2008_v13 = vmul.f32 %v2726_v4, %v1979_v7  ;;  %v2654_v14 = vpop.f32.mrb[37].mxu0  ;;  %v1936_v15 = vpop.f32.mrb[34].mxu1  ;;  %v2690_v7 = vld [vmem:[#allocation8 + $0x8] sm:$0xff]  }
 0x594   :  { %v2015_v17 = vpack.c.bf16 %v2007_v6, %v2007_v6  ;;  %v1982_v18 = vpop.f32.mrb[38].mxu0  ;;  %v2649_v19 = vpop.f32.mrb[35].mxu1  ;;  %2659 = vmatpush3.bf16.msra.mxu1 %v2690_v7 }
 0x595   :  { %v2016_v22 = vpack.c.bf16 %v2008_v13, %v2008_v13  ;;  %v2655_v23 = vpop.f32.mrb[39].mxu0 }
 0x596   :  { %v2025_v62 = vpack.i.b16 %v2015_v17, %v2013_v5  ;;  %v2027_v25 = vshrl.u32 %v2015_v17, 16 }
 0x597   :  { %v2037_v16 = vpack.i.b16 %v2016_v22, %v2014_v9  ;;  %v2039_v27 = vshrl.u32 %v2016_v22, 16 }
 0x598   :  { %v2028_v31 = vpack.i.b16 %v2027_v25, %v2026_v24  ;;  %v2056_v32 = vrot.slane %v2025_v62, %v3031_v2 }
 0x599   :  { %v2040_v34 = vpack.i.b16 %v2039_v27, %v2038_v26  ;;  %v2124_v35 = vrot.slane %v2037_v16, %v3031_v2 }
 0x59a   :  { %v2057_v37 = vcombine.low %v2048_v30, %v2056_v32  ;;  %v2058_v38 = vcombine.high %v2048_v30, %v2056_v32  ;;  %v2090_v10 = vrot.slane %v2028_v31, %v3031_v2 }
 0x59b   :  { %v2125_v39 = vcombine.low %v2116_v33, %v2124_v35  ;;  %v2126_v40 = vcombine.high %v2116_v33, %v2124_v35  ;;  %v2158_v41 = vrot.slane %v2040_v34, %v3031_v2 }
 0x59c   :  { %v2065_v28 = vrot.slane %v2057_v37, %v3035_v12  ;;  %v2072_v42 = vrot.slane %v2058_v38, %v3035_v12  ;;  %v2091_v20 = vcombine.low %v2082_v36, %v2090_v10  ;;  %v2092_v43 = vcombine.high %v2082_v36, %v2090_v10 }
 0x59d   :  { %v2133_v45 = vrot.slane %v2125_v39, %v3035_v12  ;;  %v2140_v46 = vrot.slane %v2126_v40, %v3035_v12  ;;  %v2159_v47 = vcombine.low %v2150_v11, %v2158_v41  ;;  %v2160_v48 = vcombine.high %v2150_v11, %v2158_v41 }
 0x59e   :  { %v2099_v21 = vrot.slane %v2091_v20, %v3035_v12  ;;  %v2106_v49 = vrot.slane %v2092_v43, %v3035_v12  ;;  %v2177_v29 = vcombine.low %v2065_v28, %v2072_v42  ;;  %v2480_v50 = vcombine.high %v2065_v28, %v2072_v42  ;;  %v2488_v43 = vld [vmem:[%s3325_s7] ss:$0 sm:$0xff] }
 0x59f   :  { %v2167_v52 = vrot.slane %v2159_v47, %v3035_v12  ;;  %v2174_v53 = vrot.slane %v2160_v48, %v3035_v12  ;;  %v2227_v54 = vcombine.low %v2133_v45, %v2140_v46  ;;  %v2482_v55 = vcombine.high %v2133_v45, %v2140_v46 }
 0x5a0   :  { %v2184_v56 = vrot.slane %v2177_v29, %v3031_v2  ;;  %v2192_v57 = vrot.slane %v2480_v50, %v3031_v2  ;;  %v2202_v58 = vcombine.low %v2099_v21, %v2106_v49  ;;  %v2481_v59 = vcombine.high %v2099_v21, %v2106_v49  ;;  %v2727_v21 = vld [vmem:[#allocation2] sm:$0xff] }
 0x5a1   :  { %v2234_v44 = vrot.slane %v2227_v54, %v3031_v2  ;;  %v2242_v60 = vrot.slane %v2482_v55, %v3031_v2  ;;  %v2252_v3 = vcombine.low %v2167_v52, %v2174_v53  ;;  %v2483_v63 = vcombine.high %v2167_v52, %v2174_v53  ;;  %v2728_v52 = vld [vmem:[#allocation2 + $0x8] sm:$0xff] }
 0x5a2   :  { %v2193_v0 = vcombine.low %v2184_v56, %v2192_v57  ;;  %v2209_v51 = vrot.slane %v2202_v58, %v3031_v2  ;;  %v2217_v1 = vrot.slane %v2481_v59, %v3031_v2 }
 0x5a3   :  { %v2243_v4 = vcombine.low %v2234_v44, %v2242_v60  ;;  %v2259_v5 = vrot.slane %v2252_v3, %v3031_v2  ;;  %v2267_v6 = vrot.slane %v2483_v63, %v3031_v2 }
 0x5a4   :  { %v2200_v8 = vrot.slane %v2193_v0, %v3035_v12  ;;  %v2218_v9 = vcombine.low %v2209_v51, %v2217_v1 }
 0x5a5   :  { %v2250_v13 = vrot.slane %v2243_v4, %v3035_v12  ;;  %v2268_v14 = vcombine.low %v2259_v5, %v2267_v6 }
 0x5a6   :  { %v2225_v15 = vrot.slane %v2218_v9, %v3035_v12  ;;  %v2201_v17 = vcombine.high %v2200_v8, %v2862_v61  ;;  %v2280_v19 = vshrl.u32 %v2200_v8, 16 }
 0x5a7   :  { %v2275_v18 = vrot.slane %v2268_v14, %v3035_v12  ;;  %v2251_v22 = vcombine.high %v2250_v13, %v2862_v61  ;;  %v2292_v24 = vshrl.u32 %v2250_v13, 16 }
 0x5a8   :  { %v2281_v23 = vshrl.u32 %v2225_v15, 16  ;;  %v2226_v2 = vcombine.high %v2225_v15, %v2862_v61  ;;  %v2279_v62 = vpack.i.b16 %v2225_v15, %v2200_v8  ;;  %v2286_v16 = vshrl.u32 %v2201_v17, 16 }
 0x5a9   :  { %v2293_v25 = vshrl.u32 %v2275_v18, 16  ;;  %v2276_v26 = vcombine.high %v2275_v18, %v2862_v61  ;;  %v2291_v27 = vpack.i.b16 %v2275_v18, %v2250_v13  ;;  %v2298_v33 = vshrl.u32 %v2251_v22, 16 }
 0x5aa   :  { %v2282_v30 = vpack.i.b16 %v2281_v23, %v2280_v19  ;;  %v2285_v31 = vpack.i.b16 %v2226_v2, %v2201_v17  ;;  %v2287_v32 = vshrl.u32 %v2226_v2, 16 }
 0x5ab   :  { %v2294_v34 = vpack.i.b16 %v2293_v25, %v2292_v24  ;;  %v2297_v35 = vpack.i.b16 %v2276_v26, %v2251_v22  ;;  %v2299_v12 = vshrl.u32 %v2276_v26, 16  ;;  %v2484_v36 = vcombine.low %v2279_v62, %v2291_v27 }
 0x5ac   :  { %v2288_v37 = vpack.i.b16 %v2287_v32, %v2286_v16 }
 0x5ad   :  { %v2485_v38 = vcombine.low %v2282_v30, %v2294_v34  ;;  %v2486_v10 = vcombine.low %v2285_v31, %v2297_v35  ;;  %v2300_v11 = vpack.i.b16 %v2299_v12, %v2298_v33 }
 0x5af   :  { %2307 = vrot.lane.b32.xlu1 %v2485_v38, %s2852_s28  ;;  %2312 = vrot.lane.b32.xlu0 %v2486_v10, %s2863_s21  ;;  %v2487_v39 = vcombine.low %v2288_v37, %v2300_v11 }
 0x5b3   :  { %2317 = vrot.lane.b32.xlu1 %v2487_v39, %s2864_s22 }
 0x621   :  { %v2308_v61 = vpop.permute.xlu1 %2307  ;;  %v2313_v41 = vpop.permute.xlu0 %2312 }
 0x622   :  { %v2321_v40 = vsel %vm1167_vm2, %v2484_v36, %v2308_v61 }
 0x623   :  { %v2324_v28 = vsel %vm2322_vm4, %v2321_v40, %v2313_v41 }
 0x625   :  { %v2318_v42 = vpop.permute.xlu1 %2317 }
 0x626   :  { %v2327_v20 = vsel %vm2325_vm5, %v2324_v28, %v2318_v42 }
 0x627   :  { %2661 = vmatmul.mubr.msk.bf16.vlgmr.msra.gmra.mrb[36].mxu1 %vm88_vm0, %v2327_v20 }
 0x6fa   :  { %v2387_v45 = vpop.f32.mrb[36].mxu1 }
 0x6fb   :  { %v2388_v46 = vadd.f32 %v2488_v43, %v2387_v45  ;;  %v2662_v47 = vpop.f32.mrb[37].mxu1 }
 0x6fc   :  { %v2390_v48 = vpop.f32.mrb[38].mxu1 }
 0x6fd   :  { %v2394_v49 = vadd.f32 %v2727_v21, %v2388_v46  ;;  %v2391_v29 = vadd.f32 %v2488_v43, %v2390_v48  ;;  %v2663_v50 = vpop.f32.mrb[39].mxu1 }
 0x6ff   :  { %2396 = vst.msk [vmem:[#allocation10] sm:$0xff] %vm88_vm0, %v2394_v49  ;;  %v2395_v53 = vadd.f32 %v2728_v52, %v2391_v29 }
 0x701   :  { %2397 = vst.msk [vmem:[#allocation10 + $0x8] sm:$0xff] %vm88_vm0, %v2395_v53 }
 0x702   :  { %2828 = shalt.err (!%p2825_p8)
}
 0x703   :  { %s2829_s27 = scalar_lea.hbm %s3326_s8, 256 }
 0x704   :  { %p2830_p9 = scmp.ne.s32.totalorder %s3326_s8, %s2829_s27  ;;  %p2833_p10 = scmp.lt.u32.totalorder %s2829_s27, %s3326_s8 }
 0x706   :  { %p2835_p11 = pnand %p2833_p10, %p2830_p9 }
 0x708   :  { %2838 = shalt.err (!%p2835_p11)
}
 0x709   :  { %2409 = dma.vmem_to_hbm [thread:$0]  %s2404_s24, 256, %s3326_s8, [#allocation4], %s2851_s3, %s2851_s3, %s2852_s28  }
 0x70a   :  { %2845 = dma.done.wait [#allocation4], 256  }
 0x70b   :  { %2846 = vsyncadd [#allocation4], 4294967040 }
 0x70c   :  { %2413 = vsyncpa [#allocation3], 1 }
 0x70d   :  { %2414 = vsyncpa [#allocation6], 1 }
 0x70e   :  { %2415 = vsyncpa [#allocation9], 1 }
 0x70f   :  { %2416 = vsyncpa [#allocation4], 1 }

</bundles_post_ra>
